<compile_context>
chip_gen: v7x
topology: tpu7x:2x2x1
jax: 0.10.0
libtpu: 0.0.40
codegen_flags: <defaults>
</compile_context>

<pallas_src>
import jax
import jax.numpy as jnp
from jax.experimental import pallas as pl
from jax.experimental.pallas import tpu as pltpu

# ---- small, lane-friendly synthetic CLIP-style config ----
B = 2            # batch
L = 8            # context length (n_ctx)
D = 128          # transformer width (d_model) -> lane-dense last dims
H = 4            # attention heads
HD = D // H      # head dim
N_LAYERS = 2     # transformer layers
VOCAB = 64       # vocab size
PROJ = 128       # text projection (embed) dim
EPS = 1e-5
NVEC = 8         # stacked per-layer (D,)-vector slots (6 used + 2 pad)


def _layernorm(x, w, b):
    mu = jnp.mean(x, axis=-1, keepdims=True)
    var = jnp.mean((x - mu) ** 2, axis=-1, keepdims=True)
    return (x - mu) * jax.lax.rsqrt(var + EPS) * w + b


def encoder_kernel(eot_ref,                      # SMEM scalar prefetch: (B,) int32 EOT index
                   x_ref,                        # (1, L, D) f32: token emb + positional emb
                   vecs_ref,                     # (1, NVEC, D) f32: ln1_w,ln1_b,ln2_w,ln2_b,b_attn,b_mlp
                   wqkv_ref, bqkv_ref,           # (1, D, 3D) bf16 / (1, 1, 3D) f32
                   wout_ref,                     # (1, D, D) bf16
                   wfc_ref, bfc_ref,             # (1, D, 4D) bf16 / (1, 1, 4D) f32
                   wproj_ref,                    # (1, 4D, D) bf16
                   lnf_ref,                      # (2, D) f32: ln_final w, b
                   tproj_ref,                    # (D, PROJ) bf16
                   out_ref,                      # (1, 1, PROJ) f32
                   x_sc, attn_sc):               # VMEM scratch (L, D) f32 each
    b = pl.program_id(0)        # batch index (parallel axis)
    layer = pl.program_id(1)    # layer index (arbitrary axis, weights streamed)

    @pl.when(layer == 0)
    def _():
        x_sc[...] = x_ref[0]                     # load embedded+positional activations

    x = x_sc[...]                                # (L, D) f32 residual stream
    vecs = vecs_ref[0]                           # (NVEC, D)
    ln1_w, ln1_b = vecs[0:1], vecs[1:2]
    ln2_w, ln2_b = vecs[2:3], vecs[3:4]
    b_attn, b_mlp = vecs[4:5], vecs[5:6]

    row = jax.lax.broadcasted_iota(jnp.int32, (L, L), 0)
    col = jax.lax.broadcasted_iota(jnp.int32, (L, L), 1)
    causal = col <= row
    scale = 1.0 / (HD ** 0.5)

    # ---- causal multi-head self-attention: one fused QKV matmul ----
    xn = _layernorm(x, ln1_w, ln1_b)
    qkv = jnp.dot(xn.astype(jnp.bfloat16), wqkv_ref[0],
                  preferred_element_type=jnp.float32) + bqkv_ref[0]   # (L, 3D) f32
    for h in range(H):   # per-head softmax; MXU work identical to a batched formulation
        qh = qkv[:, h * HD:(h + 1) * HD]
        kh = qkv[:, D + h * HD:D + (h + 1) * HD]
        vh = qkv[:, 2 * D + h * HD:2 * D + (h + 1) * HD]
        s = jax.lax.dot_general(qh.astype(jnp.bfloat16), kh.astype(jnp.bfloat16),
                                (((1,), (1,)), ((), ())),
                                preferred_element_type=jnp.float32) * scale   # (L, L)
        s = jnp.where(causal, s, -1e30)
        s = s - jnp.max(s, axis=-1, keepdims=True)
        p = jnp.exp(s)
        p = p * pl.reciprocal(jnp.sum(p, axis=-1, keepdims=True), approx=True)
        attn_sc[:, h * HD:(h + 1) * HD] = jnp.dot(
            p.astype(jnp.bfloat16), vh.astype(jnp.bfloat16),
            preferred_element_type=jnp.float32)                                # (L, HD)
    # concat(heads) @ W_out as ONE lane-dense matmul
    x = x + jnp.dot(attn_sc[...].astype(jnp.bfloat16), wout_ref[0],
                    preferred_element_type=jnp.float32) + b_attn

    # ---- QuickGELU MLP ----
    xn2 = _layernorm(x, ln2_w, ln2_b)
    hid = jnp.dot(xn2.astype(jnp.bfloat16), wfc_ref[0],
                  preferred_element_type=jnp.float32) + bfc_ref[0]             # (L, 4D)
    hid = hid * jax.nn.sigmoid(1.702 * hid)                                    # QuickGELU (f32)
    x = x + jnp.dot(hid.astype(jnp.bfloat16), wproj_ref[0],
                    preferred_element_type=jnp.float32) + b_mlp
    x_sc[...] = x

    # ---- last layer: EOT row gather, ln_final, text projection ----
    @pl.when(layer == N_LAYERS - 1)
    def _():
        eot = eot_ref[b]
        x_eot = x_sc[pl.ds(eot, 1), :]                                         # (1, D)
        lnf = lnf_ref[...]
        xn_f = _layernorm(x_eot, lnf[0:1], lnf[1:2])
        out = jnp.dot(xn_f.astype(jnp.bfloat16), tproj_ref[...],
                      preferred_element_type=jnp.float32)                      # (1, PROJ)
        out_ref[...] = out.reshape(1, 1, PROJ)


def encode_text_fused(x_emb, eot_idx, w):
    in_specs = [
        pl.BlockSpec((1, L, D), lambda b, l, eot: (b, 0, 0)),        # x_emb (per-batch)
        pl.BlockSpec((1, NVEC, D), lambda b, l, eot: (l, 0, 0)),     # per-layer vectors
        pl.BlockSpec((1, D, 3 * D), lambda b, l, eot: (l, 0, 0)),    # w_qkv
        pl.BlockSpec((1, 1, 3 * D), lambda b, l, eot: (l, 0, 0)),    # b_qkv
        pl.BlockSpec((1, D, D), lambda b, l, eot: (l, 0, 0)),        # w_out
        pl.BlockSpec((1, D, 4 * D), lambda b, l, eot: (l, 0, 0)),    # w_fc
        pl.BlockSpec((1, 1, 4 * D), lambda b, l, eot: (l, 0, 0)),    # b_fc
        pl.BlockSpec((1, 4 * D, D), lambda b, l, eot: (l, 0, 0)),    # w_proj
        pl.BlockSpec((2, D), lambda b, l, eot: (0, 0)),              # ln_final (w; b)
        pl.BlockSpec((D, PROJ), lambda b, l, eot: (0, 0)),           # text_projection
    ]
    out_spec = pl.BlockSpec((1, 1, PROJ), lambda b, l, eot: (b, 0, 0))

    return pl.pallas_call(
        encoder_kernel,
        out_shape=jax.ShapeDtypeStruct((B, 1, PROJ), jnp.float32),
        grid_spec=pltpu.PrefetchScalarGridSpec(
            num_scalar_prefetch=1,
            grid=(B, N_LAYERS),
            in_specs=in_specs,
            out_specs=out_spec,
            scratch_shapes=[pltpu.VMEM((L, D), jnp.float32),    # residual stream carry
                            pltpu.VMEM((L, D), jnp.float32)],   # per-head attention slab
        ),
        compiler_params=pltpu.CompilerParams(
            dimension_semantics=("parallel", "arbitrary")),
    )(eot_idx, x_emb, w["vecs"], w["w_qkv"], w["b_qkv"], w["w_out"],
      w["w_fc"], w["b_fc"], w["w_proj"], w["ln_final"], w["text_projection"])


@jax.jit
def text_encoder_forward(tokens, packed):
    # Embedding lookup (gather) + positional add and the EOT argmax stay in XLA;
    # everything heavy runs in the single Pallas call.
    x_emb = jnp.take(packed["token_embedding"], tokens, axis=0)       # (B, L, D) f32
    x_emb = x_emb + packed["positional_embedding"][None]
    eot_idx = jnp.argmax(tokens, axis=-1).astype(jnp.int32)           # (B,)
    out = encode_text_fused(x_emb, eot_idx, packed)                   # (B, 1, PROJ)
    return out[:, 0, :]                                               # (B, PROJ)


def make_params(key):
    """CLIP-style parameter layout ([in, out] matrices, (1, N) vectors)."""
    def normal(k, shape, std=0.02):
        return (std * jax.random.normal(k, shape)).astype(jnp.float32)

    keys = jax.random.split(key, 3 + N_LAYERS)
    layers = []
    for li in range(N_LAYERS):
        lk = jax.random.split(keys[3 + li], 8)
        layers.append({
            "ln1_w": jnp.ones((1, D), jnp.float32),
            "ln1_b": jnp.zeros((1, D), jnp.float32),
            "w_qkv": normal(lk[0], (D, 3 * D)),
            "b_qkv": normal(lk[1], (1, 3 * D), std=0.01),
            "w_out": normal(lk[2], (D, D)),
            "b_out": normal(lk[3], (1, D), std=0.01),
            "ln2_w": jnp.ones((1, D), jnp.float32),
            "ln2_b": jnp.zeros((1, D), jnp.float32),
            "w_fc": normal(lk[4], (D, 4 * D)),
            "b_fc": normal(lk[5], (1, 4 * D), std=0.01),
            "w_proj": normal(lk[6], (4 * D, D)),
            "b_proj": normal(lk[7], (1, D), std=0.01),
        })
    return {
        "token_embedding": normal(keys[0], (VOCAB, D)),
        "positional_embedding": normal(keys[1], (L, D), std=0.01),
        "layers": layers,
        "ln_final_w": jnp.ones((1, D), jnp.float32),
        "ln_final_b": jnp.zeros((1, D), jnp.float32),
        "text_projection": normal(keys[2], (D, PROJ)),
    }


def pack_params(params):
    """Stack per-layer weights along a leading layer axis (streamed over the grid),
    consolidate the small (1, D) LN/bias vectors, and cast matmul weights to bf16."""
    def stack(name, dtype=None):
        a = jnp.stack([lp[name] for lp in params["layers"]])
        return a.astype(dtype) if dtype is not None else a

    vecs = jnp.stack([
        jnp.concatenate([lp["ln1_w"], lp["ln1_b"], lp["ln2_w"], lp["ln2_b"],
                         lp["b_out"], lp["b_proj"],
                         jnp.zeros((NVEC - 6, D), jnp.float32)], axis=0)
        for lp in params["layers"]])                                   # (NL, NVEC, D)

    return {
        "token_embedding": params["token_embedding"],                  # f32 (XLA gather only)
        "positional_embedding": params["positional_embedding"],       # f32
        "vecs": vecs,                                                  # f32
        "w_qkv": stack("w_qkv", jnp.bfloat16),                         # (NL, D, 3D)
        "b_qkv": stack("b_qkv"),                                       # (NL, 1, 3D) f32
        "w_out": stack("w_out", jnp.bfloat16),                         # (NL, D, D)
        "w_fc": stack("w_fc", jnp.bfloat16),                           # (NL, D, 4D)
        "b_fc": stack("b_fc"),                                         # (NL, 1, 4D) f32
        "w_proj": stack("w_proj", jnp.bfloat16),                       # (NL, 4D, D)
        "ln_final": jnp.concatenate([params["ln_final_w"],
                                     params["ln_final_b"]], axis=0),   # (2, D) f32
        "text_projection": params["text_projection"].astype(jnp.bfloat16),  # (D, PROJ)
    }


if __name__ == "__main__":
    key = jax.random.PRNGKey(0)
    pkey, tkey = jax.random.split(key)
    params = make_params(pkey)
    packed = pack_params(params)

    # Tokens: random ids, with the EOT (= highest id, VOCAB-1) in the last slot so
    # argmax(-1) picks it — matching CLIP's EOT-selection convention.
    tokens = jax.random.randint(tkey, (B, L), minval=1, maxval=VOCAB - 1, dtype=jnp.int32)
    tokens = tokens.at[:, -1].set(VOCAB - 1)

    out = text_encoder_forward(tokens, packed)
    out = jax.block_until_ready(out)
    assert out.shape == (B, PROJ) and out.dtype == jnp.float32
    assert bool(jnp.all(jnp.isfinite(out)))
    print("KERNEL_OK")
</pallas_src>

<mosaic_0001>
module attributes {stable_mosaic.version = 11 : i64} {
  func.func @encoder_kernel(%arg0: i32, %arg1: i32, %arg2: memref<2xi32, #tpu.memory_space<smem>>, %arg3: memref<1x8x128xf32, #tpu.memory_space<vmem>>, %arg4: memref<1x8x128xf32, #tpu.memory_space<vmem>>, %arg5: memref<1x128x384xbf16, #tpu.memory_space<vmem>>, %arg6: memref<1x1x384xf32, #tpu.memory_space<vmem>>, %arg7: memref<1x128x128xbf16, #tpu.memory_space<vmem>>, %arg8: memref<1x128x512xbf16, #tpu.memory_space<vmem>>, %arg9: memref<1x1x512xf32, #tpu.memory_space<vmem>>, %arg10: memref<1x512x128xbf16, #tpu.memory_space<vmem>>, %arg11: memref<2x128xf32, #tpu.memory_space<vmem>>, %arg12: memref<128x128xbf16, #tpu.memory_space<vmem>>, %arg13: memref<1x1x128xf32, #tpu.memory_space<vmem>>, %arg14: memref<8x128xf32, #tpu.memory_space<vmem>>, %arg15: memref<8x128xf32, #tpu.memory_space<vmem>>) attributes {dimension_semantics = [#tpu.dimension_semantics<parallel>, #tpu.dimension_semantics<arbitrary>], iteration_bounds = array<i64: 2, 2>, scalar_prefetch = 1 : i64, scratch_operands = 2 : i64, tpu.core_type = #tpu.core_type<tc>, window_params = [{transform_indices = @transform_0, window_bounds = array<i64: 1, 8, 128>}, {transform_indices = @transform_1, window_bounds = array<i64: 1, 8, 128>}, {transform_indices = @transform_2, window_bounds = array<i64: 1, 128, 384>}, {transform_indices = @transform_3, window_bounds = array<i64: 1, 1, 384>}, {transform_indices = @transform_4, window_bounds = array<i64: 1, 128, 128>}, {transform_indices = @transform_5, window_bounds = array<i64: 1, 128, 512>}, {transform_indices = @transform_6, window_bounds = array<i64: 1, 1, 512>}, {transform_indices = @transform_7, window_bounds = array<i64: 1, 512, 128>}, {pipeline_mode = #tpu.pipeline_mode<synchronous>, transform_indices = @transform_8, window_bounds = array<i64: 2, 128>}, {pipeline_mode = #tpu.pipeline_mode<synchronous>, transform_indices = @transform_9, window_bounds = array<i64: 128, 128>}, {transform_indices = @transform_10, window_bounds = array<i64: 1, 1, 128>}]} {
    %c0_i32 = arith.constant 0 : i32
    %0 = arith.cmpi eq, %arg1, %c0_i32 : i32
    %1 = arith.extui %0 : i1 to i32
    %c0_i32_0 = arith.constant 0 : i32
    %2 = arith.cmpi ne, %1, %c0_i32_0 : i32
    scf.if %2 {
      %c0_72 = arith.constant 0 : index
      %c0_73 = arith.constant 0 : index
      %c0_74 = arith.constant 0 : index
      %198 = vector.load %arg3[%c0_72, %c0_73, %c0_74] : memref<1x8x128xf32, #tpu.memory_space<vmem>>, vector<1x8x128xf32>
      %199 = vector.shape_cast %198 : vector<1x8x128xf32> to vector<8x128xf32>
      %c0_75 = arith.constant 0 : index
      %c0_76 = arith.constant 0 : index
      %200 = vector.load %arg14[%c0_75, %c0_76] : memref<8x128xf32, #tpu.memory_space<vmem>>, vector<8x128xf32>
      tpu.vector_store %arg14[%c0_75, %c0_76], %199 {strides = array<i32>} : memref<8x128xf32, #tpu.memory_space<vmem>>, vector<8x128xf32>,
    } else {
    }
    %c0 = arith.constant 0 : index
    %c0_1 = arith.constant 0 : index
    %3 = vector.load %arg14[%c0, %c0_1] : memref<8x128xf32, #tpu.memory_space<vmem>>, vector<8x128xf32>
    %c0_2 = arith.constant 0 : index
    %c0_3 = arith.constant 0 : index
    %c0_4 = arith.constant 0 : index
    %4 = vector.load %arg4[%c0_2, %c0_3, %c0_4] : memref<1x8x128xf32, #tpu.memory_space<vmem>>, vector<1x8x128xf32>
    %5 = vector.shape_cast %4 : vector<1x8x128xf32> to vector<8x128xf32>
    %6 = vector.extract_strided_slice %5 {offsets = [0, 0], sizes = [1, 128], strides = [1, 1]} : vector<8x128xf32> to vector<1x128xf32>
    %7 = vector.extract_strided_slice %5 {offsets = [1, 0], sizes = [1, 128], strides = [1, 1]} : vector<8x128xf32> to vector<1x128xf32>
    %8 = vector.extract_strided_slice %5 {offsets = [2, 0], sizes = [1, 128], strides = [1, 1]} : vector<8x128xf32> to vector<1x128xf32>
    %9 = vector.extract_strided_slice %5 {offsets = [3, 0], sizes = [1, 128], strides = [1, 1]} : vector<8x128xf32> to vector<1x128xf32>
    %10 = vector.extract_strided_slice %5 {offsets = [4, 0], sizes = [1, 128], strides = [1, 1]} : vector<8x128xf32> to vector<1x128xf32>
    %11 = vector.extract_strided_slice %5 {offsets = [5, 0], sizes = [1, 128], strides = [1, 1]} : vector<8x128xf32> to vector<1x128xf32>
    %12 = tpu.iota {dimensions = array<i32: 0>} : vector<8x8xi32>
    %13 = tpu.iota {dimensions = array<i32: 1>} : vector<8x8xi32>
    %14 = arith.cmpi sle, %13, %12 : vector<8x8xi32>
    %cst = arith.constant dense<0.000000e+00> : vector<8xf32>
    %15 = vector.multi_reduction <add>, %3, %cst [1] : vector<8x128xf32> to vector<8xf32>
    %16 = vector.shape_cast %15 : vector<8xf32> to vector<8x1xf32>
    %cst_5 = arith.constant 1.280000e+02 : f32
    %17 = vector.broadcast %cst_5 : f32 to vector<8x1xf32>
    %18 = arith.divf %16, %17 : vector<8x1xf32>
    %19 = vector.broadcast %18 : vector<8x1xf32> to vector<8x128xf32>
    %20 = arith.subf %3, %19 : vector<8x128xf32>
    %21 = arith.mulf %20, %20 : vector<8x128xf32>
    %cst_6 = arith.constant dense<0.000000e+00> : vector<8xf32>
    %22 = vector.multi_reduction <add>, %21, %cst_6 [1] : vector<8x128xf32> to vector<8xf32>
    %23 = vector.shape_cast %22 : vector<8xf32> to vector<8x1xf32>
    %cst_7 = arith.constant 1.280000e+02 : f32
    %24 = vector.broadcast %cst_7 : f32 to vector<8x1xf32>
    %25 = arith.divf %23, %24 : vector<8x1xf32>
    %26 = vector.broadcast %18 : vector<8x1xf32> to vector<8x128xf32>
    %27 = arith.subf %3, %26 : vector<8x128xf32>
    %cst_8 = arith.constant 9.99999974E-6 : f32
    %28 = vector.broadcast %cst_8 : f32 to vector<8x1xf32>
    %29 = arith.addf %25, %28 : vector<8x1xf32>
    %30 = math.rsqrt %29 : vector<8x1xf32>
    %31 = vector.broadcast %30 : vector<8x1xf32> to vector<8x128xf32>
    %32 = arith.mulf %27, %31 : vector<8x128xf32>
    %33 = vector.broadcast %6 : vector<1x128xf32> to vector<8x128xf32>
    %34 = arith.mulf %32, %33 : vector<8x128xf32>
    %35 = vector.broadcast %7 : vector<1x128xf32> to vector<8x128xf32>
    %36 = arith.addf %34, %35 : vector<8x128xf32>
    %37 = arith.truncf %36 : vector<8x128xf32> to vector<8x128xbf16>
    %c0_9 = arith.constant 0 : index
    %c0_10 = arith.constant 0 : index
    %c0_11 = arith.constant 0 : index
    %38 = vector.load %arg5[%c0_9, %c0_10, %c0_11] : memref<1x128x384xbf16, #tpu.memory_space<vmem>>, vector<1x128x384xbf16>
    %39 = vector.shape_cast %38 : vector<1x128x384xbf16> to vector<128x384xbf16>
    %cst_12 = arith.constant dense<0.000000e+00> : vector<8x384xf32>
    %40 = tpu.matmul %37, %39, %cst_12 {dimension_numbers = #tpu.dot_dimension_numbers<[1], [0], [0], [1], [0, 0, 1, 1], [], []>} : vector<8x128xbf16>, vector<128x384xbf16>, vector<8x384xf32> -> vector<8x384xf32>
    %c0_13 = arith.constant 0 : index
    %c0_14 = arith.constant 0 : index
    %c0_15 = arith.constant 0 : index
    %41 = vector.load %arg6[%c0_13, %c0_14, %c0_15] : memref<1x1x384xf32, #tpu.memory_space<vmem>>, vector<1x1x384xf32>
    %42 = vector.shape_cast %41 : vector<1x1x384xf32> to vector<1x384xf32>
    %43 = vector.broadcast %42 : vector<1x384xf32> to vector<8x384xf32>
    %44 = arith.addf %40, %43 : vector<8x384xf32>
    %45 = vector.extract_strided_slice %44 {offsets = [0, 0], sizes = [8, 32], strides = [1, 1]} : vector<8x384xf32> to vector<8x32xf32>
    %46 = vector.extract_strided_slice %44 {offsets = [0, 128], sizes = [8, 32], strides = [1, 1]} : vector<8x384xf32> to vector<8x32xf32>
    %47 = vector.extract_strided_slice %44 {offsets = [0, 256], sizes = [8, 32], strides = [1, 1]} : vector<8x384xf32> to vector<8x32xf32>
    %48 = arith.truncf %45 : vector<8x32xf32> to vector<8x32xbf16>
    %49 = arith.truncf %46 : vector<8x32xf32> to vector<8x32xbf16>
    %cst_16 = arith.constant dense<0.000000e+00> : vector<8x8xf32>
    %50 = tpu.matmul %48, %49, %cst_16 {dimension_numbers = #tpu.dot_dimension_numbers<[1], [1], [0], [0], [0, 0, 1, 0], [], []>} : vector<8x32xbf16>, vector<8x32xbf16>, vector<8x8xf32> -> vector<8x8xf32>
    %cst_17 = arith.constant 0.176776692 : f32
    %51 = vector.broadcast %cst_17 : f32 to vector<8x8xf32>
    %52 = arith.mulf %50, %51 : vector<8x8xf32>
    %cst_18 = arith.constant -1.000000e+30 : f32
    %53 = vector.broadcast %cst_18 : f32 to vector<8x8xf32>
    %54 = arith.select %14, %52, %53 : vector<8x8xi1>, vector<8x8xf32>
    %cst_19 = arith.constant dense<0xFF800000> : vector<8xf32>
    %55 = vector.multi_reduction <maximumf>, %54, %cst_19 [1] : vector<8x8xf32> to vector<8xf32>
    %56 = vector.shape_cast %55 : vector<8xf32> to vector<8x1xf32>
    %57 = vector.broadcast %56 : vector<8x1xf32> to vector<8x8xf32>
    %58 = arith.subf %54, %57 : vector<8x8xf32>
    %59 = math.exp %58 : vector<8x8xf32>
    %cst_20 = arith.constant dense<0.000000e+00> : vector<8xf32>
    %60 = vector.multi_reduction <add>, %59, %cst_20 [1] : vector<8x8xf32> to vector<8xf32>
    %61 = vector.shape_cast %60 : vector<8xf32> to vector<8x1xf32>
    %62 = tpu.reciprocal %61 {approx = true} : vector<8x1xf32> -> vector<8x1xf32>
    %63 = vector.broadcast %62 : vector<8x1xf32> to vector<8x8xf32>
    %64 = arith.mulf %59, %63 : vector<8x8xf32>
    %65 = arith.truncf %64 : vector<8x8xf32> to vector<8x8xbf16>
    %66 = arith.truncf %47 : vector<8x32xf32> to vector<8x32xbf16>
    %cst_21 = arith.constant dense<0.000000e+00> : vector<8x32xf32>
    %67 = tpu.matmul %65, %66, %cst_21 {dimension_numbers = #tpu.dot_dimension_numbers<[1], [0], [0], [1], [0, 0, 1, 1], [], []>} : vector<8x8xbf16>, vector<8x32xbf16>, vector<8x32xf32> -> vector<8x32xf32>
    %c0_22 = arith.constant 0 : index
    %c0_23 = arith.constant 0 : index
    %68 = vector.load %arg15[%c0_22, %c0_23] : memref<8x128xf32, #tpu.memory_space<vmem>>, vector<8x32xf32>
    tpu.vector_store %arg15[%c0_22, %c0_23], %67 {strides = array<i32>} : memref<8x128xf32, #tpu.memory_space<vmem>>, vector<8x32xf32>,
    %69 = vector.extract_strided_slice %44 {offsets = [0, 32], sizes = [8, 32], strides = [1, 1]} : vector<8x384xf32> to vector<8x32xf32>
    %70 = vector.extract_strided_slice %44 {offsets = [0, 160], sizes = [8, 32], strides = [1, 1]} : vector<8x384xf32> to vector<8x32xf32>
    %71 = vector.extract_strided_slice %44 {offsets = [0, 288], sizes = [8, 32], strides = [1, 1]} : vector<8x384xf32> to vector<8x32xf32>
    %72 = arith.truncf %69 : vector<8x32xf32> to vector<8x32xbf16>
    %73 = arith.truncf %70 : vector<8x32xf32> to vector<8x32xbf16>
    %cst_24 = arith.constant dense<0.000000e+00> : vector<8x8xf32>
    %74 = tpu.matmul %72, %73, %cst_24 {dimension_numbers = #tpu.dot_dimension_numbers<[1], [1], [0], [0], [0, 0, 1, 0], [], []>} : vector<8x32xbf16>, vector<8x32xbf16>, vector<8x8xf32> -> vector<8x8xf32>
    %cst_25 = arith.constant 0.176776692 : f32
    %75 = vector.broadcast %cst_25 : f32 to vector<8x8xf32>
    %76 = arith.mulf %74, %75 : vector<8x8xf32>
    %cst_26 = arith.constant -1.000000e+30 : f32
    %77 = vector.broadcast %cst_26 : f32 to vector<8x8xf32>
    %78 = arith.select %14, %76, %77 : vector<8x8xi1>, vector<8x8xf32>
    %cst_27 = arith.constant dense<0xFF800000> : vector<8xf32>
    %79 = vector.multi_reduction <maximumf>, %78, %cst_27 [1] : vector<8x8xf32> to vector<8xf32>
    %80 = vector.shape_cast %79 : vector<8xf32> to vector<8x1xf32>
    %81 = vector.broadcast %80 : vector<8x1xf32> to vector<8x8xf32>
    %82 = arith.subf %78, %81 : vector<8x8xf32>
    %83 = math.exp %82 : vector<8x8xf32>
    %cst_28 = arith.constant dense<0.000000e+00> : vector<8xf32>
    %84 = vector.multi_reduction <add>, %83, %cst_28 [1] : vector<8x8xf32> to vector<8xf32>
    %85 = vector.shape_cast %84 : vector<8xf32> to vector<8x1xf32>
    %86 = tpu.reciprocal %85 {approx = true} : vector<8x1xf32> -> vector<8x1xf32>
    %87 = vector.broadcast %86 : vector<8x1xf32> to vector<8x8xf32>
    %88 = arith.mulf %83, %87 : vector<8x8xf32>
    %89 = arith.truncf %88 : vector<8x8xf32> to vector<8x8xbf16>
    %90 = arith.truncf %71 : vector<8x32xf32> to vector<8x32xbf16>
    %cst_29 = arith.constant dense<0.000000e+00> : vector<8x32xf32>
    %91 = tpu.matmul %89, %90, %cst_29 {dimension_numbers = #tpu.dot_dimension_numbers<[1], [0], [0], [1], [0, 0, 1, 1], [], []>} : vector<8x8xbf16>, vector<8x32xbf16>, vector<8x32xf32> -> vector<8x32xf32>
    %c0_30 = arith.constant 0 : index
    %c32 = arith.constant 32 : index
    %92 = vector.load %arg15[%c0_30, %c32] : memref<8x128xf32, #tpu.memory_space<vmem>>, vector<8x32xf32>
    tpu.vector_store %arg15[%c0_30, %c32], %91 {strides = array<i32>} : memref<8x128xf32, #tpu.memory_space<vmem>>, vector<8x32xf32>,
    %93 = vector.extract_strided_slice %44 {offsets = [0, 64], sizes = [8, 32], strides = [1, 1]} : vector<8x384xf32> to vector<8x32xf32>
    %94 = vector.extract_strided_slice %44 {offsets = [0, 192], sizes = [8, 32], strides = [1, 1]} : vector<8x384xf32> to vector<8x32xf32>
    %95 = vector.extract_strided_slice %44 {offsets = [0, 320], sizes = [8, 32], strides = [1, 1]} : vector<8x384xf32> to vector<8x32xf32>
    %96 = arith.truncf %93 : vector<8x32xf32> to vector<8x32xbf16>
    %97 = arith.truncf %94 : vector<8x32xf32> to vector<8x32xbf16>
    %cst_31 = arith.constant dense<0.000000e+00> : vector<8x8xf32>
    %98 = tpu.matmul %96, %97, %cst_31 {dimension_numbers = #tpu.dot_dimension_numbers<[1], [1], [0], [0], [0, 0, 1, 0], [], []>} : vector<8x32xbf16>, vector<8x32xbf16>, vector<8x8xf32> -> vector<8x8xf32>
    %cst_32 = arith.constant 0.176776692 : f32
    %99 = vector.broadcast %cst_32 : f32 to vector<8x8xf32>
    %100 = arith.mulf %98, %99 : vector<8x8xf32>
    %cst_33 = arith.constant -1.000000e+30 : f32
    %101 = vector.broadcast %cst_33 : f32 to vector<8x8xf32>
    %102 = arith.select %14, %100, %101 : vector<8x8xi1>, vector<8x8xf32>
    %cst_34 = arith.constant dense<0xFF800000> : vector<8xf32>
    %103 = vector.multi_reduction <maximumf>, %102, %cst_34 [1] : vector<8x8xf32> to vector<8xf32>
    %104 = vector.shape_cast %103 : vector<8xf32> to vector<8x1xf32>
    %105 = vector.broadcast %104 : vector<8x1xf32> to vector<8x8xf32>
    %106 = arith.subf %102, %105 : vector<8x8xf32>
    %107 = math.exp %106 : vector<8x8xf32>
    %cst_35 = arith.constant dense<0.000000e+00> : vector<8xf32>
    %108 = vector.multi_reduction <add>, %107, %cst_35 [1] : vector<8x8xf32> to vector<8xf32>
    %109 = vector.shape_cast %108 : vector<8xf32> to vector<8x1xf32>
    %110 = tpu.reciprocal %109 {approx = true} : vector<8x1xf32> -> vector<8x1xf32>
    %111 = vector.broadcast %110 : vector<8x1xf32> to vector<8x8xf32>
    %112 = arith.mulf %107, %111 : vector<8x8xf32>
    %113 = arith.truncf %112 : vector<8x8xf32> to vector<8x8xbf16>
    %114 = arith.truncf %95 : vector<8x32xf32> to vector<8x32xbf16>
    %cst_36 = arith.constant dense<0.000000e+00> : vector<8x32xf32>
    %115 = tpu.matmul %113, %114, %cst_36 {dimension_numbers = #tpu.dot_dimension_numbers<[1], [0], [0], [1], [0, 0, 1, 1], [], []>} : vector<8x8xbf16>, vector<8x32xbf16>, vector<8x32xf32> -> vector<8x32xf32>
    %c0_37 = arith.constant 0 : index
    %c64 = arith.constant 64 : index
    %116 = vector.load %arg15[%c0_37, %c64] : memref<8x128xf32, #tpu.memory_space<vmem>>, vector<8x32xf32>
    tpu.vector_store %arg15[%c0_37, %c64], %115 {strides = array<i32>} : memref<8x128xf32, #tpu.memory_space<vmem>>, vector<8x32xf32>,
    %117 = vector.extract_strided_slice %44 {offsets = [0, 96], sizes = [8, 32], strides = [1, 1]} : vector<8x384xf32> to vector<8x32xf32>
    %118 = vector.extract_strided_slice %44 {offsets = [0, 224], sizes = [8, 32], strides = [1, 1]} : vector<8x384xf32> to vector<8x32xf32>
    %119 = vector.extract_strided_slice %44 {offsets = [0, 352], sizes = [8, 32], strides = [1, 1]} : vector<8x384xf32> to vector<8x32xf32>
    %120 = arith.truncf %117 : vector<8x32xf32> to vector<8x32xbf16>
    %121 = arith.truncf %118 : vector<8x32xf32> to vector<8x32xbf16>
    %cst_38 = arith.constant dense<0.000000e+00> : vector<8x8xf32>
    %122 = tpu.matmul %120, %121, %cst_38 {dimension_numbers = #tpu.dot_dimension_numbers<[1], [1], [0], [0], [0, 0, 1, 0], [], []>} : vector<8x32xbf16>, vector<8x32xbf16>, vector<8x8xf32> -> vector<8x8xf32>
    %cst_39 = arith.constant 0.176776692 : f32
    %123 = vector.broadcast %cst_39 : f32 to vector<8x8xf32>
    %124 = arith.mulf %122, %123 : vector<8x8xf32>
    %cst_40 = arith.constant -1.000000e+30 : f32
    %125 = vector.broadcast %cst_40 : f32 to vector<8x8xf32>
    %126 = arith.select %14, %124, %125 : vector<8x8xi1>, vector<8x8xf32>
    %cst_41 = arith.constant dense<0xFF800000> : vector<8xf32>
    %127 = vector.multi_reduction <maximumf>, %126, %cst_41 [1] : vector<8x8xf32> to vector<8xf32>
    %128 = vector.shape_cast %127 : vector<8xf32> to vector<8x1xf32>
    %129 = vector.broadcast %128 : vector<8x1xf32> to vector<8x8xf32>
    %130 = arith.subf %126, %129 : vector<8x8xf32>
    %131 = math.exp %130 : vector<8x8xf32>
    %cst_42 = arith.constant dense<0.000000e+00> : vector<8xf32>
    %132 = vector.multi_reduction <add>, %131, %cst_42 [1] : vector<8x8xf32> to vector<8xf32>
    %133 = vector.shape_cast %132 : vector<8xf32> to vector<8x1xf32>
    %134 = tpu.reciprocal %133 {approx = true} : vector<8x1xf32> -> vector<8x1xf32>
    %135 = vector.broadcast %134 : vector<8x1xf32> to vector<8x8xf32>
    %136 = arith.mulf %131, %135 : vector<8x8xf32>
    %137 = arith.truncf %136 : vector<8x8xf32> to vector<8x8xbf16>
    %138 = arith.truncf %119 : vector<8x32xf32> to vector<8x32xbf16>
    %cst_43 = arith.constant dense<0.000000e+00> : vector<8x32xf32>
    %139 = tpu.matmul %137, %138, %cst_43 {dimension_numbers = #tpu.dot_dimension_numbers<[1], [0], [0], [1], [0, 0, 1, 1], [], []>} : vector<8x8xbf16>, vector<8x32xbf16>, vector<8x32xf32> -> vector<8x32xf32>
    %c0_44 = arith.constant 0 : index
    %c96 = arith.constant 96 : index
    %140 = vector.load %arg15[%c0_44, %c96] : memref<8x128xf32, #tpu.memory_space<vmem>>, vector<8x32xf32>
    tpu.vector_store %arg15[%c0_44, %c96], %139 {strides = array<i32>} : memref<8x128xf32, #tpu.memory_space<vmem>>, vector<8x32xf32>,
    %c0_45 = arith.constant 0 : index
    %c0_46 = arith.constant 0 : index
    %141 = vector.load %arg15[%c0_45, %c0_46] : memref<8x128xf32, #tpu.memory_space<vmem>>, vector<8x128xf32>
    %142 = arith.truncf %141 : vector<8x128xf32> to vector<8x128xbf16>
    %c0_47 = arith.constant 0 : index
    %c0_48 = arith.constant 0 : index
    %c0_49 = arith.constant 0 : index
    %143 = vector.load %arg7[%c0_47, %c0_48, %c0_49] : memref<1x128x128xbf16, #tpu.memory_space<vmem>>, vector<1x128x128xbf16>
    %144 = vector.shape_cast %143 : vector<1x128x128xbf16> to vector<128x128xbf16>
    %cst_50 = arith.constant dense<0.000000e+00> : vector<8x128xf32>
    %145 = tpu.matmul %142, %144, %cst_50 {dimension_numbers = #tpu.dot_dimension_numbers<[1], [0], [0], [1], [0, 0, 1, 1], [], []>} : vector<8x128xbf16>, vector<128x128xbf16>, vector<8x128xf32> -> vector<8x128xf32>
    %146 = arith.addf %3, %145 : vector<8x128xf32>
    %147 = vector.broadcast %10 : vector<1x128xf32> to vector<8x128xf32>
    %148 = arith.addf %146, %147 : vector<8x128xf32>
    %cst_51 = arith.constant dense<0.000000e+00> : vector<8xf32>
    %149 = vector.multi_reduction <add>, %148, %cst_51 [1] : vector<8x128xf32> to vector<8xf32>
    %150 = vector.shape_cast %149 : vector<8xf32> to vector<8x1xf32>
    %cst_52 = arith.constant 1.280000e+02 : f32
    %151 = vector.broadcast %cst_52 : f32 to vector<8x1xf32>
    %152 = arith.divf %150, %151 : vector<8x1xf32>
    %153 = vector.broadcast %152 : vector<8x1xf32> to vector<8x128xf32>
    %154 = arith.subf %148, %153 : vector<8x128xf32>
    %155 = arith.mulf %154, %154 : vector<8x128xf32>
    %cst_53 = arith.constant dense<0.000000e+00> : vector<8xf32>
    %156 = vector.multi_reduction <add>, %155, %cst_53 [1] : vector<8x128xf32> to vector<8xf32>
    %157 = vector.shape_cast %156 : vector<8xf32> to vector<8x1xf32>
    %cst_54 = arith.constant 1.280000e+02 : f32
    %158 = vector.broadcast %cst_54 : f32 to vector<8x1xf32>
    %159 = arith.divf %157, %158 : vector<8x1xf32>
    %160 = vector.broadcast %152 : vector<8x1xf32> to vector<8x128xf32>
    %161 = arith.subf %148, %160 : vector<8x128xf32>
    %cst_55 = arith.constant 9.99999974E-6 : f32
    %162 = vector.broadcast %cst_55 : f32 to vector<8x1xf32>
    %163 = arith.addf %159, %162 : vector<8x1xf32>
    %164 = math.rsqrt %163 : vector<8x1xf32>
    %165 = vector.broadcast %164 : vector<8x1xf32> to vector<8x128xf32>
    %166 = arith.mulf %161, %165 : vector<8x128xf32>
    %167 = vector.broadcast %8 : vector<1x128xf32> to vector<8x128xf32>
    %168 = arith.mulf %166, %167 : vector<8x128xf32>
    %169 = vector.broadcast %9 : vector<1x128xf32> to vector<8x128xf32>
    %170 = arith.addf %168, %169 : vector<8x128xf32>
    %171 = arith.truncf %170 : vector<8x128xf32> to vector<8x128xbf16>
    %c0_56 = arith.constant 0 : index
    %c0_57 = arith.constant 0 : index
    %c0_58 = arith.constant 0 : index
    %172 = vector.load %arg8[%c0_56, %c0_57, %c0_58] : memref<1x128x512xbf16, #tpu.memory_space<vmem>>, vector<1x128x512xbf16>
    %173 = vector.shape_cast %172 : vector<1x128x512xbf16> to vector<128x512xbf16>
    %cst_59 = arith.constant dense<0.000000e+00> : vector<8x512xf32>
    %174 = tpu.matmul %171, %173, %cst_59 {dimension_numbers = #tpu.dot_dimension_numbers<[1], [0], [0], [1], [0, 0, 1, 1], [], []>} : vector<8x128xbf16>, vector<128x512xbf16>, vector<8x512xf32> -> vector<8x512xf32>
    %c0_60 = arith.constant 0 : index
    %c0_61 = arith.constant 0 : index
    %c0_62 = arith.constant 0 : index
    %175 = vector.load %arg9[%c0_60, %c0_61, %c0_62] : memref<1x1x512xf32, #tpu.memory_space<vmem>>, vector<1x1x512xf32>
    %176 = vector.shape_cast %175 : vector<1x1x512xf32> to vector<1x512xf32>
    %177 = vector.broadcast %176 : vector<1x512xf32> to vector<8x512xf32>
    %178 = arith.addf %174, %177 : vector<8x512xf32>
    %cst_63 = arith.constant 1.702000e+00 : f32
    %179 = vector.broadcast %cst_63 : f32 to vector<8x512xf32>
    %180 = arith.mulf %179, %178 : vector<8x512xf32>
    %181 = arith.negf %180 : vector<8x512xf32>
    %182 = math.exp %181 : vector<8x512xf32>
    %cst_64 = arith.constant 1.000000e+00 : f32
    %183 = vector.broadcast %cst_64 : f32 to vector<8x512xf32>
    %184 = arith.addf %183, %182 : vector<8x512xf32>
    %185 = arith.divf %183, %184 : vector<8x512xf32>
    %186 = arith.mulf %178, %185 : vector<8x512xf32>
    %187 = arith.truncf %186 : vector<8x512xf32> to vector<8x512xbf16>
    %c0_65 = arith.constant 0 : index
    %c0_66 = arith.constant 0 : index
    %c0_67 = arith.constant 0 : index
    %188 = vector.load %arg10[%c0_65, %c0_66, %c0_67] : memref<1x512x128xbf16, #tpu.memory_space<vmem>>, vector<1x512x128xbf16>
    %189 = vector.shape_cast %188 : vector<1x512x128xbf16> to vector<512x128xbf16>
    %cst_68 = arith.constant dense<0.000000e+00> : vector<8x128xf32>
    %190 = tpu.matmul %187, %189, %cst_68 {dimension_numbers = #tpu.dot_dimension_numbers<[1], [0], [0], [1], [0, 0, 1, 1], [], []>} : vector<8x512xbf16>, vector<512x128xbf16>, vector<8x128xf32> -> vector<8x128xf32>
    %191 = arith.addf %148, %190 : vector<8x128xf32>
    %192 = vector.broadcast %11 : vector<1x128xf32> to vector<8x128xf32>
    %193 = arith.addf %191, %192 : vector<8x128xf32>
    %c0_69 = arith.constant 0 : index
    %c0_70 = arith.constant 0 : index
    %194 = vector.load %arg14[%c0_69, %c0_70] : memref<8x128xf32, #tpu.memory_space<vmem>>, vector<8x128xf32>
    tpu.vector_store %arg14[%c0_69, %c0_70], %193 {strides = array<i32>} : memref<8x128xf32, #tpu.memory_space<vmem>>, vector<8x128xf32>,
    %c1_i32 = arith.constant 1 : i32
    %195 = arith.cmpi eq, %arg1, %c1_i32 : i32
    %196 = arith.extui %195 : i1 to i32
    %c0_i32_71 = arith.constant 0 : i32
    %197 = arith.cmpi ne, %196, %c0_i32_71 : i32
    scf.if %197 {
      %198 = arith.index_cast %arg0 : i32 to index
      %199 = memref.load %arg2[%198] : memref<2xi32, #tpu.memory_space<smem>>
      %200 = arith.index_cast %199 : i32 to index
      %c0_72 = arith.constant 0 : index
      %201 = vector.load %arg14[%200, %c0_72] : memref<8x128xf32, #tpu.memory_space<vmem>>, vector<1x128xf32>
      %c0_73 = arith.constant 0 : index
      %c0_74 = arith.constant 0 : index
      %202 = vector.load %arg11[%c0_73, %c0_74] : memref<2x128xf32, #tpu.memory_space<vmem>>, vector<2x128xf32>
      %203 = vector.extract_strided_slice %202 {offsets = [0, 0], sizes = [1, 128], strides = [1, 1]} : vector<2x128xf32> to vector<1x128xf32>
      %204 = vector.extract_strided_slice %202 {offsets = [1, 0], sizes = [1, 128], strides = [1, 1]} : vector<2x128xf32> to vector<1x128xf32>
      %cst_75 = arith.constant dense<0.000000e+00> : vector<1xf32>
      %205 = vector.multi_reduction <add>, %201, %cst_75 [1] : vector<1x128xf32> to vector<1xf32>
      %206 = vector.shape_cast %205 : vector<1xf32> to vector<1x1xf32>
      %cst_76 = arith.constant 1.280000e+02 : f32
      %207 = vector.broadcast %cst_76 : f32 to vector<1x1xf32>
      %208 = arith.divf %206, %207 : vector<1x1xf32>
      %209 = vector.broadcast %208 : vector<1x1xf32> to vector<1x128xf32>
      %210 = arith.subf %201, %209 : vector<1x128xf32>
      %211 = arith.mulf %210, %210 : vector<1x128xf32>
      %cst_77 = arith.constant dense<0.000000e+00> : vector<1xf32>
      %212 = vector.multi_reduction <add>, %211, %cst_77 [1] : vector<1x128xf32> to vector<1xf32>
      %213 = vector.shape_cast %212 : vector<1xf32> to vector<1x1xf32>
      %cst_78 = arith.constant 1.280000e+02 : f32
      %214 = vector.broadcast %cst_78 : f32 to vector<1x1xf32>
      %215 = arith.divf %213, %214 : vector<1x1xf32>
      %216 = vector.broadcast %208 : vector<1x1xf32> to vector<1x128xf32>
      %217 = arith.subf %201, %216 : vector<1x128xf32>
      %cst_79 = arith.constant 9.99999974E-6 : f32
      %218 = vector.broadcast %cst_79 : f32 to vector<1x1xf32>
      %219 = arith.addf %215, %218 : vector<1x1xf32>
      %220 = math.rsqrt %219 : vector<1x1xf32>
      %221 = vector.broadcast %220 : vector<1x1xf32> to vector<1x128xf32>
      %222 = arith.mulf %217, %221 : vector<1x128xf32>
      %223 = arith.mulf %222, %203 : vector<1x128xf32>
      %224 = arith.addf %223, %204 : vector<1x128xf32>
      %225 = arith.truncf %224 : vector<1x128xf32> to vector<1x128xbf16>
      %c0_80 = arith.constant 0 : index
      %c0_81 = arith.constant 0 : index
      %226 = vector.load %arg12[%c0_80, %c0_81] : memref<128x128xbf16, #tpu.memory_space<vmem>>, vector<128x128xbf16>
      %cst_82 = arith.constant dense<0.000000e+00> : vector<1x128xf32>
      %227 = tpu.matmul %225, %226, %cst_82 {dimension_numbers = #tpu.dot_dimension_numbers<[1], [0], [0], [1], [0, 0, 1, 1], [], []>} : vector<1x128xbf16>, vector<128x128xbf16>, vector<1x128xf32> -> vector<1x128xf32>
      %228 = vector.shape_cast %227 : vector<1x128xf32> to vector<1x1x128xf32>
      %c0_83 = arith.constant 0 : index
      %c0_84 = arith.constant 0 : index
      %c0_85 = arith.constant 0 : index
      %229 = vector.load %arg13[%c0_83, %c0_84, %c0_85] : memref<1x1x128xf32, #tpu.memory_space<vmem>>, vector<1x1x128xf32>
      tpu.vector_store %arg13[%c0_83, %c0_84, %c0_85], %228 {strides = array<i32>} : memref<1x1x128xf32, #tpu.memory_space<vmem>>, vector<1x1x128xf32>,
    } else {
    }
    return
  }
  func.func @transform_0(%arg0: i32, %arg1: i32, %arg2: memref<2xi32, #tpu.memory_space<smem>>) -> (i32, i32, i32) {
    %c0_i32 = arith.constant 0 : i32
    %c0_i32_0 = arith.constant 0 : i32
    %c0_i32_1 = arith.constant 0 : i32
    return %arg0, %c0_i32, %c0_i32_0 : i32, i32, i32
  }
  func.func @transform_1(%arg0: i32, %arg1: i32, %arg2: memref<2xi32, #tpu.memory_space<smem>>) -> (i32, i32, i32) {
    %c0_i32 = arith.constant 0 : i32
    %c0_i32_0 = arith.constant 0 : i32
    %c0_i32_1 = arith.constant 0 : i32
    return %arg1, %c0_i32, %c0_i32_0 : i32, i32, i32
  }
  func.func @transform_2(%arg0: i32, %arg1: i32, %arg2: memref<2xi32, #tpu.memory_space<smem>>) -> (i32, i32, i32) {
    %c0_i32 = arith.constant 0 : i32
    %c0_i32_0 = arith.constant 0 : i32
    %c0_i32_1 = arith.constant 0 : i32
    return %arg1, %c0_i32, %c0_i32_0 : i32, i32, i32
  }
  func.func @transform_3(%arg0: i32, %arg1: i32, %arg2: memref<2xi32, #tpu.memory_space<smem>>) -> (i32, i32, i32) {
    %c0_i32 = arith.constant 0 : i32
    %c0_i32_0 = arith.constant 0 : i32
    %c0_i32_1 = arith.constant 0 : i32
    return %arg1, %c0_i32, %c0_i32_0 : i32, i32, i32
  }
  func.func @transform_4(%arg0: i32, %arg1: i32, %arg2: memref<2xi32, #tpu.memory_space<smem>>) -> (i32, i32, i32) {
    %c0_i32 = arith.constant 0 : i32
    %c0_i32_0 = arith.constant 0 : i32
    %c0_i32_1 = arith.constant 0 : i32
    return %arg1, %c0_i32, %c0_i32_0 : i32, i32, i32
  }
  func.func @transform_5(%arg0: i32, %arg1: i32, %arg2: memref<2xi32, #tpu.memory_space<smem>>) -> (i32, i32, i32) {
    %c0_i32 = arith.constant 0 : i32
    %c0_i32_0 = arith.constant 0 : i32
    %c0_i32_1 = arith.constant 0 : i32
    return %arg1, %c0_i32, %c0_i32_0 : i32, i32, i32
  }
  func.func @transform_6(%arg0: i32, %arg1: i32, %arg2: memref<2xi32, #tpu.memory_space<smem>>) -> (i32, i32, i32) {
    %c0_i32 = arith.constant 0 : i32
    %c0_i32_0 = arith.constant 0 : i32
    %c0_i32_1 = arith.constant 0 : i32
    return %arg1, %c0_i32, %c0_i32_0 : i32, i32, i32
  }
  func.func @transform_7(%arg0: i32, %arg1: i32, %arg2: memref<2xi32, #tpu.memory_space<smem>>) -> (i32, i32, i32) {
    %c0_i32 = arith.constant 0 : i32
    %c0_i32_0 = arith.constant 0 : i32
    %c0_i32_1 = arith.constant 0 : i32
    return %arg1, %c0_i32, %c0_i32_0 : i32, i32, i32
  }
  func.func @transform_8(%arg0: i32, %arg1: i32, %arg2: memref<2xi32, #tpu.memory_space<smem>>) -> (i32, i32) {
    %c0_i32 = arith.constant 0 : i32
    %c0_i32_0 = arith.constant 0 : i32
    %c0_i32_1 = arith.constant 0 : i32
    return %c0_i32, %c0_i32_0 : i32, i32
  }
  func.func @transform_9(%arg0: i32, %arg1: i32, %arg2: memref<2xi32, #tpu.memory_space<smem>>) -> (i32, i32) {
    %c0_i32 = arith.constant 0 : i32
    %c0_i32_0 = arith.constant 0 : i32
    %c0_i32_1 = arith.constant 0 : i32
    return %c0_i32, %c0_i32_0 : i32, i32
  }
  func.func @transform_10(%arg0: i32, %arg1: i32, %arg2: memref<2xi32, #tpu.memory_space<smem>>) -> (i32, i32, i32) {
    %c0_i32 = arith.constant 0 : i32
    %c0_i32_0 = arith.constant 0 : i32
    %c0_i32_1 = arith.constant 0 : i32
    return %arg0, %c0_i32, %c0_i32_0 : i32, i32, i32
  }
}

</mosaic_0001>

<bundles_post_ra>
// kernel: text_encoder_forward.1
= control target key start
LH: loop header
LB: loop body
LE: loop exit
PB: predicated region body
PF: predicated region fallthrough
CT: control target
= control target key end

     0   :  { %s4035_s0 = inlined_call_operand.vmem [shape: s32[2], index: 0, kind: input, shape index: {}]   ;;  %s4036_s1 = inlined_call_operand.vmem [shape: f32[2,8,128], index: 1, kind: input, shape index: {}]   ;;  %s4037_s2 = inlined_call_operand.vmem [shape: f32[2,8,128], index: 2, kind: input, shape index: {}]   ;;  %s4038_s3 = inlined_call_operand.hbm [shape: bf16[2,128,384], index: 3, kind: input, shape index: {}]   ;;  %s4039_s4 = inlined_call_operand.vmem [shape: f32[2,1,384], index: 4, kind: input, shape index: {}]   ;;  %s4040_s5 = inlined_call_operand.vmem [shape: bf16[2,128,128], index: 5, kind: input, shape index: {}]   ;;  %s4041_s6 = inlined_call_operand.hbm [shape: bf16[2,128,512], index: 6, kind: input, shape index: {}]   ;;  %s4042_s7 = inlined_call_operand.vmem [shape: f32[2,1,512], index: 7, kind: input, shape index: {}]   ;;  %s4043_s8 = inlined_call_operand.hbm [shape: bf16[2,512,128], index: 8, kind: input, shape index: {}]   ;;  %s4044_s9 = inlined_call_operand.vmem [shape: f32[2,128], index: 9, kind: input, shape index: {}]   ;;  %s4045_s10 = inlined_call_operand.vmem [shape: bf16[128,128], index: 10, kind: input, shape index: {}]   ;;  %s4046_s11 = inlined_call_operand.hbm [shape: f32[2,1,128], index: 11, kind: output, shape index: {}]  }
   0x1   :  { %4063 = sst [smem:[#allocation28_spill]] %s4036_s1  ;;  %s16_s19 = sshll.u32 %s4035_s0, 4  ;;  %s17_s19 = int_to_ptr.vmem [resolvable:$true] %s16_s19 }
   0x2   :  { %4064 = sst [smem:[#allocation29_spill]] %s4038_s3  ;;  %s3097_s20 = scalar_lea.vmem %s17_s19, 16 }
   0x3   :  { %4065 = sst [smem:[#allocation30_spill]] %s4041_s6  ;;  %p3098_p0 = scmp.ne.s32.totalorder %s17_s19, %s3097_s20 }
   0x4   :  { %4066 = sst [smem:[#allocation31_spill]] %s4042_s7  ;;  %p3102_p1 = scmp.lt.s32.totalorder %s17_s19, %s17_s19 }
   0x5   :  { %4067 = sst [smem:[#allocation32_spill]] %s4044_s9  ;;  %p3103_p2 = scmp.lt.s32.totalorder %s3097_s20, %s3097_s20 }
   0x6   :  { %4068 = sst [smem:[#allocation33_spill]] %s4045_s10 }
   0x7   :  { %4069 = sst [smem:[#allocation34_spill]] %s4046_s11  ;;  %p3104_p3 = por %p3103_p2, %p3102_p1 }
   0x9   :  { %p3105_p4 = pnand %p3104_p3, %p3098_p0 }
   0xb   :  { %3108 = shalt.err (!%p3105_p4)  }
   0xc   :  { %s3329_s21 = smov [#allocation5]  }
   0xd   :  { %19 = dma.vmem_to_smem %s17_s19, 16, %s3329_s21, [#allocation4] }
   0xe   :  { %3271 = dma.done.wait [#allocation4], 16 }
   0xf   :  { %3272 = vsyncadd [#allocation4], 4294967280 }
  0x10   :  { %21 = sfence }
  0x11   :  { %22 = vsyncpa [#allocation7], 0 }
  0x12   :  { %24 = vsyncpa [#allocation7 + $0x1], 0 }
  0x13   :  { %25 = vsyncpa [#allocation10], 0 }
  0x14   :  { %27 = vsyncpa [#allocation10 + $0x1], 0 }
  0x15   :  { %28 = vsyncpa [#allocation8], 0 }
  0x16   :  { %30 = vsyncpa [#allocation8 + $0x1], 0  ;;  %s3411_s0 = smov 0   ;;  %s3413_s22 = smov 0  }
  0x17   :  { %s3415_s23 = smov 0   ;;  %s3417_s24 = smov 0  }
  0x18   :  { %s3419_s25 = smov 0   ;;  %s3421_s26 = smov 0  }
  0x19   :  { %s3423_s27 = smov 0   ;;  %s3425_s28 = smov 0  }
  0x1a   :  { %s3427_s29 = smov 0   ;;  %s3429_s30 = smov 0  }
  0x1b   :  { %s3431_s12 = smov 0  }
  0x1c LB: > { %4070 = sst [smem:[#allocation17_spill]] %s3287_s0  ;;  %s3465_s13 = sadd.s32 4294967295, %s3327_s12   ;;  %s3327_s12 = sphi %s3431_s12, %s36_s12   ;;  %s3323_s30 = sphi %s3429_s30, %s4115_s30   ;;  %s3319_s29 = sphi %s3427_s29, %s4114_s29   ;;  %s3315_s28 = sphi %s3425_s28, %s4113_s28   ;;  %s3311_s27 = sphi %s3423_s27, %s4112_s27   ;;  %s3307_s26 = sphi %s3421_s26, %s4111_s26   ;;  %s3303_s25 = sphi %s3419_s25, %s4119_s25   ;;  %s3299_s24 = sphi %s3417_s24, %s4118_s24   ;;  %s3295_s23 = sphi %s3415_s23, %s4109_s23   ;;  %s3291_s22 = sphi %s3413_s22, %s4117_s22   ;;  %s3287_s0 = sphi %s3411_s0, %s4116_s0  }
  0x1d   : > { %4071 = sst [smem:[#allocation18_spill]] %s3295_s23  ;;  %s2463_s14 = sadd.s32 4294967294, %s3327_s12  }
  0x1e   : > { %4072 = sst [smem:[#allocation19_spill]] %s3307_s26  ;;  %s45_s15 = sadd.s32 1, %s3319_s29 }
  0x1f   : > { %4073 = sst [smem:[#allocation20_spill]] %s3319_s29  ;;  %s48_s16 = sadd.s32 1, %s3323_s30 }
  0x20   : > { %4074 = sst [smem:[#allocation21_spill]] %s3323_s30  ;;  %p46_p5 = scmp.ge.s32.totalorder %s45_s15, 2 }
  0x21   : > { %s107_s17 = sadd.s32 1, %s3307_s26  ;;  %p114_p6 = scmp.ne.s32.totalorder %s3307_s26, %s3303_s25 }
  0x22   : > { %p115_p7 = scmp.eq.s32.totalorder %s3327_s12, 0  ;;  %s4121_s15 = smov (%p46_p5, %s45_s15), 0 }
  0x23   : > { %4075 = sst [smem:[#allocation22_spill]] %s4121_s15  ;;  %s4123_s16 = smov (!%p46_p5, %s48_s16), %s3323_s30 }
  0x24   : > { %s104_s18 = ssub.s32 %s3319_s29, %s4121_s15  ;;  %p3479_p8 = por %p115_p7, %p114_p6 }
  0x25   : > { %p50_p9 = scmp.ge.s32.totalorder %s4123_s16, 2  ;;  %p105_p10 = scmp.eq.s32.totalorder %s104_s18, 0 }
  0x26   : > { %p120_p11 = scmp.ne.s32.totalorder %s3303_s25, %s3299_s24  ;;  %p121_p12 = scmp.eq.s32.totalorder %s3465_s13, 0 }
  0x27   : > { %s4125_s16 = smov (%p50_p9, %s4123_s16), 0  ;;  %s305_s11 = sadd.s32 1, %s3295_s23 }
  0x28   : > { %4077 = sst [smem:[#allocation23_spill]] %s4125_s16  ;;  %p3490_p13 = por %p121_p12, %p120_p11 }
  0x29   : > { %s3488_s20 = scalar_select %p105_p10, %s3307_s26, %s107_s17  }
  0x2a   : > { %s4079_s21 = scalar_select %p3490_p13, 1, 0 }
  0x2b   : > { %4078 = sst [smem:[#allocation24_spill]] %s3488_s20  ;;  %s302_s15 = ssub.s32 %s3323_s30, %s4125_s16 }
  0x2c   : > { %p303_p0 = scmp.eq.s32.totalorder %s302_s15, 0  ;;  %p315_p1 = scmp.ne.s32.totalorder %s3295_s23, %s3291_s22 }
  0x2d   : > { %p316_p2 = scmp.eq.s32.totalorder %s3465_s13, 3  ;;  %p321_p4 = scmp.ne.s32.totalorder %s3291_s22, %s3287_s0 }
  0x2e   : > { %s3501_s24 = scalar_select %p303_p0, %s3295_s23, %s305_s11  }
  0x2f   : > { %p3503_p3 = por %p316_p2, %p315_p1  ;;  %p322_p5 = scmp.eq.s32.totalorder %s2463_s14, 3 }
  0x30   : > { %4080 = sst [smem:[#allocation25_spill]] %s3501_s24  ;;  %p2826_p6 = scmp.lt.s32.totalorder %s3327_s12, 4 }
  0x31   : > { %s4081_s18 = scalar_select %p3503_p3, 1, 0 }
  0x32   : > { %s3511_s17 = sand.u32 1, %s3307_s26   ;;  %p3513_p7 = por %p322_p5, %p321_p4 }
  0x33   : > { %4082 = sst [smem:[#allocation26_spill]] %s4081_s18  ;;  %s398_s15 = sand.u32 1, %s3327_s12  }
  0x34   : > { %s4083_s16 = scalar_select %p3513_p7, 1, 0 }
  0x35   : > { %p3520_p9 = pnand %p2826_p6, %p3479_p8  ;;  %s4057_s30 = sshll.u32 %s3511_s17, 8 }
  0x36   : > { %4084 = sst [smem:[#allocation27_spill]] %s4083_s16  ;;  %s4058_s20 = sshll.u32 %s3319_s29, 12 }
  0x37   : > { %s4086_s6 = sld [smem:[#allocation30_spill]]  ;;  %s402_s23 = scalar_lea.vmem [#allocation9], %s4057_s30 }
  0x38   : > { %s409_s19 = sshll.u32 %s402_s23, 4  ;;  %s3537_s16 = scalar_lea.sflag [#allocation10], %s398_s15  ;;  %s3535_s19 = int_to_ptr.vmem [resolvable:$true] %s409_s19 }
  0x39   : > { %p3543_p10 = pneg %p3520_p9 }
  0x3d   : > { %s3531_s26 = scalar_lea.hbm %s4086_s6, %s4058_s20  ;;  %s3114_s30 = scalar_lea.hbm %s4086_s6, 8192 }
  0x3e   : > { %s3109_s0 = scalar_lea.hbm %s3531_s26, 4096  ;;  %p3115_p0 = scmp.lt.u32.totalorder %s3531_s26, %s4086_s6 }
  0x3f   : > { %p3110_p8 = scmp.ne.s32.totalorder %s3531_s26, %s3109_s0  ;;  %p3116_p1 = scmp.lt.u32.totalorder %s3114_s30, %s3109_s0 }
  0x40   : > { %p3118_p4 = scmp.lt.u32.totalorder %s3109_s0, %s3531_s26 }
  0x41   : > { %p3112_p11 = pnand %p3543_p10, %p3110_p8  ;;  %p3117_p2 = por %p3116_p1, %p3115_p0 }
  0x43   : > { %p3113_p12 = pneg %p3112_p11  ;;  %p3119_p5 = por %p3118_p4, %p3117_p2 }
  0x45   : > { %p3120_p6 = pnand %p3119_p5, %p3113_p12 }
  0x47   : > { %3123 = shalt.err (!%p3120_p6)
}
  0x48   : > { %s3124_s15 = scalar_lea.vmem %s3535_s19, 4096  ;;  %s3330_s24 = smov [#allocation9]  }
  0x49   : > { %p3125_p8 = scmp.ne.s32.totalorder %s3535_s19, %s3124_s15  ;;  %s3129_s14 = sshll.u32 %s3330_s24, 4  ;;  %s3130_s14 = int_to_ptr.vmem [resolvable:$false] %s3129_s14 }
  0x4a   : > { %s3131_s20 = scalar_lea.vmem %s3130_s14, 8192  ;;  %p3132_p3 = scmp.lt.s32.totalorder %s3535_s19, %s3130_s14 }
  0x4b   : > { %p3127_p11 = pnand %p3125_p8, %p3543_p10  ;;  %p3133_p13 = scmp.lt.s32.totalorder %s3131_s20, %s3124_s15 }
  0x4d   : > { %p3128_p7 = pneg %p3127_p11  ;;  %p3134_p0 = por %p3133_p13, %p3132_p3 }
  0x4f   : > { %p3135_p1 = pnand %p3134_p0, %p3128_p7 }
  0x51   : > { %3138 = shalt.err (!%p3135_p1)
}
  0x52   : > { %s3331_s0 = smov 256   ;;  %s3332_s30 = smov 16  }
  0x53   : > { %2818 = dma.hbm_to_vmem [thread:$0]  (!%p3520_p9), %s3531_s26, 4096, %s3535_s19, %s3537_s16, %s3331_s0, %s3331_s0, %s3332_s30  }
  0x54   : > { %s4088_s23 = sshll.u32 %s3319_s29, 12  ;;  %s4089_s20 = sshll.u32 %s3511_s17, 8 }
  0x55   : > { %s3572_s14 = scalar_lea.hbm %s4043_s8, %s4088_s23  ;;  %s430_s6 = scalar_lea.vmem [#allocation11], %s4089_s20 }
  0x56   : > { %s437_s9 = sshll.u32 %s430_s6, 4  ;;  %p2473_p13 = scmp.ge.s32.totalorder %s3327_s12, 1  ;;  %s3576_s9 = int_to_ptr.vmem [resolvable:$true] %s437_s9 }
  0x57   : > { %p445_p3 = scmp.lt.s32.totalorder %s3327_s12, 5  ;;  %s2800_s7 = smul.u32 192, %s3511_s17 }
  0x58   : > { %s2801_s26 = smul.u32 3072, %s3319_s29  ;;  %s4091_s3 = sld [smem:[#allocation29_spill]] }
  0x59   : > { %p3580_p7 = pnand %p2473_p13, %p445_p3  ;;  %s366_s6 = scalar_lea.vmem [#allocation6], %s2800_s7 }
  0x5a   : > { %s373_s23 = sshll.u32 %s366_s6, 4  ;;  %s363_s15 = scalar_lea.sflag [#allocation7], %s3511_s17  ;;  %s3591_s23 = int_to_ptr.vmem [resolvable:$true] %s373_s23 }
  0x5b   : > { %s4090_s10 = scalar_select %p3580_p7, 1, 0 }
  0x5e   : > { %s3589_s30 = scalar_lea.hbm %s4091_s3, %s2801_s26  ;;  %s3144_s19 = scalar_lea.hbm %s4091_s3, 6144 }
  0x5f   : > { %s3139_s24 = scalar_lea.hbm %s3589_s30, 3072  ;;  %p3145_p5 = scmp.lt.u32.totalorder %s3589_s30, %s4091_s3 }
  0x60   : > { %p3140_p12 = scmp.ne.s32.totalorder %s3589_s30, %s3139_s24  ;;  %p3146_p6 = scmp.lt.u32.totalorder %s3144_s19, %s3139_s24 }
  0x61   : > { %p3148_p11 = scmp.lt.u32.totalorder %s3139_s24, %s3589_s30 }
  0x62   : > { %p3142_p2 = pnand %p3140_p12, %p3543_p10  ;;  %p3147_p8 = por %p3146_p6, %p3145_p5 }
  0x64   : > { %p3143_p4 = pneg %p3142_p2  ;;  %p3149_p0 = por %p3148_p11, %p3147_p8 }
  0x66   : > { %p3150_p1 = pnand %p3149_p0, %p3143_p4 }
  0x68   : > { %3153 = shalt.err (!%p3150_p1)
}
  0x69   : > { %s3154_s7 = scalar_lea.vmem %s3591_s23, 3072  ;;  %s3333_s29 = smov [#allocation6]  }
  0x6a   : > { %p3155_p13 = scmp.ne.s32.totalorder %s3591_s23, %s3154_s7  ;;  %s3159_s6 = sshll.u32 %s3333_s29, 4  ;;  %s3160_s6 = int_to_ptr.vmem [resolvable:$false] %s3159_s6 }
  0x6b   : > { %s3161_s20 = scalar_lea.vmem %s3160_s6, 6144  ;;  %p3162_p2 = scmp.lt.s32.totalorder %s3591_s23, %s3160_s6 }
  0x6c   : > { %p3157_p3 = pnand %p3155_p13, %p3543_p10  ;;  %p3163_p7 = scmp.lt.s32.totalorder %s3161_s20, %s3154_s7 }
  0x6e   : > { %p3158_p12 = pneg %p3157_p3  ;;  %p3164_p5 = por %p3163_p7, %p3162_p2 }
  0x70   : > { %p3165_p6 = pnand %p3164_p5, %p3158_p12 }
  0x72   : > { %3168 = shalt.err (!%p3165_p6)
}
  0x73   : > { %s3334_s24 = smov 192   ;;  %s3335_s19 = smov 12  }
  0x74   : > { %2815 = dma.hbm_to_vmem [thread:$0]  (!%p3520_p9), %s3589_s30, 3072, %s3591_s23, %s363_s15, %s3334_s24, %s3334_s24, %s3335_s19  }
  0x75   : > { %s3169_s26 = scalar_lea.hbm %s3572_s14, 4096  ;;  %s3174_s29 = scalar_lea.hbm %s4043_s8, 8192 }
  0x76   : > { %p3170_p4 = scmp.ne.s32.totalorder %s3572_s14, %s3169_s26  ;;  %p3175_p11 = scmp.lt.u32.totalorder %s3572_s14, %s4043_s8 }
  0x77   : > { %p3176_p0 = scmp.lt.u32.totalorder %s3174_s29, %s3169_s26  ;;  %p3178_p13 = scmp.lt.u32.totalorder %s3169_s26, %s3572_s14 }
  0x78   : > { %p3172_p7 = pnand %p3170_p4, %p3543_p10 }
  0x79   : > { %p3177_p1 = por %p3176_p0, %p3175_p11 }
  0x7a   : > { %p3173_p8 = pneg %p3172_p7 }
  0x7b   : > { %p3179_p3 = por %p3178_p13, %p3177_p1 }
  0x7d   : > { %p3180_p12 = pnand %p3179_p3, %p3173_p8 }
  0x7f   : > { %3183 = shalt.err (!%p3180_p12)
}
  0x80   : > { %s3184_s17 = scalar_lea.vmem %s3576_s9, 4096  ;;  %s3336_s30 = smov [#allocation11]  }
  0x81   : > { %p3185_p2 = scmp.ne.s32.totalorder %s3576_s9, %s3184_s17  ;;  %s3189_s23 = sshll.u32 %s3336_s30, 4  ;;  %s3190_s23 = int_to_ptr.vmem [resolvable:$false] %s3189_s23 }
  0x82   : > { %s3191_s15 = scalar_lea.vmem %s3190_s23, 8192  ;;  %p3192_p4 = scmp.lt.s32.totalorder %s3576_s9, %s3190_s23 }
  0x83   : > { %p3187_p5 = pnand %p3185_p2, %p3543_p10  ;;  %p3193_p7 = scmp.lt.s32.totalorder %s3191_s15, %s3184_s17 }
  0x85   : > { %p3188_p6 = pneg %p3187_p5  ;;  %p3194_p11 = por %p3193_p7, %p3192_p4 }
  0x87   : > { %p3195_p0 = pnand %p3194_p11, %p3188_p6 }
  0x89   : > { %3198 = shalt.err (!%p3195_p0)
}
  0x8a   : > { %s3337_s24 = smov 64   ;;  %s3338_s19 = smov 4  }
  0x8b   : > { %2821 = dma.hbm_to_vmem [thread:$0]  (!%p3520_p9), %s3572_s14, 4096, %s3576_s9, %s3537_s16, %s3337_s24, %s3337_s24, %s3338_s19  }
  0x8c   : > { %p4092_p10 = scmp.ne.s32.totalorder %s4090_s10, 0 }
  0x8d   : > { %s451_s18 = sand.u32 (!%p4092_p10), 1, %s3303_s25   ;;  %p4093_p8 = scmp.ne.s32.totalorder (!%p4092_p10), %s4079_s21, 0 }
  0x8e   : > { %449 = sbr.rel (%p4092_p10) target bundleno = 3700 (0xe74), region = 60  ;;  %s452_s0 = scalar_lea.sflag (!%p4092_p10), [#allocation7], %s451_s18 }
  0x8f   : > { %s2802_s26 = smul.u32 (!%p4092_p10), 192, %s451_s18 }
  0x91   : > { %s3642_s7 = scalar_lea.vmem (!%p4092_p10), [#allocation6], %s2802_s26 }
  0x95   : > { %3274 = dma.done.wait (%p4093_p8), %s452_s0, 3072  }
  0x96   : > { %3276 = vsyncadd (%p4093_p8), %s452_s0, 4294964224  ;;  %s460_s29 = sand.u32 1, %s3465_s13   ;;  %s2474_s11 = sshll.u32 %s451_s18, 8 }
  0x97   : > { %s461_s9 = scalar_lea.sflag [#allocation10], %s460_s29  ;;  %s3649_s16 = scalar_lea.vmem [#allocation9], %s2474_s11 }
  0x98   : > { %3278 = dma.done.wait (%p4093_p8), %s461_s9, 8192  }
  0x99   : > { %3280 = vsyncadd (%p4093_p8), %s461_s9, 4294959104  ;;  %p540_p9 = scmp.lt.s32.totalorder %s3315_s28, 1  ;;  %p544_p1 = scmp.lt.s32.totalorder %s3311_s27, 1 }
  0x9a   : > { %s4094_s1 = sld [smem:[#allocation28_spill]]  ;;  %s4095_s17 = sld [smem:[#allocation31_spill]] }
  0x9b   : > { %s541_s14 = scalar_select %p540_p9, %s3315_s28, 1 }
  0x9c   : > { %s545_s13 = scalar_select %p544_p1, %s3311_s27, 1 }
  0x9d   : > { %s2476_s6 = sshll.u32 %s541_s14, 3  ;;  %s4096_s15 = sand.u32 1, %s3291_s22  }
  0x9e   : > { %s2477_s23 = sshll.u32 %s545_s13, 3  ;;  %s2803_s19 = smul.u32 3, %s545_s13 }
  0x9f   : > { %s3666_s24 = scalar_lea.vmem %s4037_s2, %s2477_s23  ;;  %s2604_s18 = sshll.u32 %s545_s13, 6 }
  0xa0   : > { %s543_s30 = scalar_lea.vmem %s4094_s1, %s2476_s6  ;;  %s2480_s26 = sshll.u32 %s545_s13, 2 }
  0xa1   : > { %s3671_s9 = scalar_lea.vmem %s4039_s4, %s2803_s19  ;;  %s3676_s3 = scalar_lea.vmem %s4040_s5, %s2604_s18 }
  0xa2   : > { %s3681_s1 = scalar_lea.vmem %s4095_s17, %s2480_s26  ;;  %s3683_s23 = scalar_lea.vmem [#allocation11], %s2474_s11 }
  0xa3   : > { %s3687_s21 = scalar_lea.vmem [#allocation12], %s4096_s15  ;;  %p2481_p13 = scmp.ne.s32.totalorder %s3311_s27, 0 }
  0xa4   : > { %v566_v0 = vld [vmem:[%s543_s30] sm:$0xff] (!%p2481_p13) }
  0xa5   : > { %565 = sbr.rel (%p2481_p13) target bundleno = 172 (0xac), region = 76  ;;  %567 = vst [vmem:[#allocation2] sm:$0xff] (!%p2481_p13), %v566_v0 }
  0xac PF: > { %v3690_v1 = vld [vmem:[#allocation2] sm:$0xff]  ;;  %v2933_v3 = vld [vmem:[%s3642_s7] ss:$12 sps:$4 sm:$0xff]   ;;  %v3339_v4 = vmov 0.0   ;;  %v2935_v6 = vld [vmem:[%s3642_s7 + $0x1c] ss:$12 sps:$4 sm:$0xff]   ;;  %v570_v34 = vlaneseq }
  0xad   : > { %575 = vadd.xlane.f32.xlu0 %v3690_v1  ;;  %v2931_v2 = vld [vmem:[%s3642_s7 + $0x4] ss:$12 sps:$4 sm:$0xff]   ;;  %2692 = vmatprep.subr.bf16.mxu1 %v3339_v4  ;;  %v2934_v5 = vld [vmem:[%s3642_s7 + $0x8] ss:$12 sps:$4 sm:$0xff]   ;;  %v2938_v8 = vld [vmem:[%s3642_s7 + $0x20] ss:$12 sps:$4 sm:$0xff]  }
  0xae   : > { %v2937_v7 = vld [vmem:[%s3642_s7 + $0x18] ss:$12 sps:$4 sm:$0xff]   ;;  %775 = vmatprep.subr.bf16.mxu0 %v2931_v2  ;;  %v2939_v9 = vld [vmem:[%s3642_s7 + $0x34] ss:$12 sps:$4 sm:$0xff]   ;;  %2693 = vmatpush3.bf16.msra.mxu1 %v2934_v5  ;;  %v2941_v14 = vld [vmem:[%s3642_s7 + $0x30] ss:$12 sps:$4 sm:$0xff]  }
  0xaf   : > { %776 = vmatpush1.bf16.msra.mxu0 %v2933_v3  ;;  %2694 = vmatprep.subr.bf16.mxu1 %v3339_v4  ;;  %v2942_v15 = vld [vmem:[%s3642_s7 + $0x38] ss:$12 sps:$4 sm:$0xff]   ;;  %v2945_v17 = vld [vmem:[%s3642_s7 + $0x48] ss:$12 sps:$4 sm:$0xff]   ;;  %v2946_v18 = vld [vmem:[%s3642_s7 + $0x50] ss:$12 sps:$4 sm:$0xff]  }
  0xb0   : > { %777 = vmatprep.subr.bf16.mxu0 %v2935_v6  ;;  %v2943_v16 = vld [vmem:[%s3642_s7 + $0x4c] ss:$12 sps:$4 sm:$0xff]   ;;  %v2947_v19 = vld [vmem:[%s3642_s7 + $0x64] ss:$12 sps:$4 sm:$0xff]   ;;  %v2950_v21 = vld [vmem:[%s3642_s7 + $0x68] ss:$12 sps:$4 sm:$0xff]  }
  0xb1   : > { %v2949_v20 = vld [vmem:[%s3642_s7 + $0x60] ss:$12 sps:$4 sm:$0xff]   ;;  %v2951_v22 = vld [vmem:[%s3642_s7 + $0x7c] ss:$12 sps:$4 sm:$0xff]   ;;  %v2953_v23 = vld [vmem:[%s3642_s7 + $0x78] ss:$12 sps:$4 sm:$0xff]  }
  0xb2   : > { %2695 = vmatpush3.bf16.msra.mxu1 %v2938_v8  ;;  %v2954_v24 = vld [vmem:[%s3642_s7 + $0x80] ss:$12 sps:$4 sm:$0xff]   ;;  %v3340_v26 = vmov 0   ;;  %vm3341_vm0 = vmmov 0   ;;  %v2957_v27 = vld [vmem:[%s3642_s7 + $0x90] ss:$12 sps:$4 sm:$0xff]  }
  0xb3   : > { %778 = vmatpush1.bf16.msra.mxu0 %v2937_v7  ;;  %2696 = vmatprep.subr.bf16.mxu1 %v3339_v4  ;;  %v2955_v25 = vld [vmem:[%s3642_s7 + $0x94] ss:$12 sps:$4 sm:$0xff]   ;;  %v2958_v28 = vld [vmem:[%s3642_s7 + $0x98] ss:$12 sps:$4 sm:$0xff]   ;;  %v2962_v31 = vld [vmem:[%s3642_s7 + $0xb0] ss:$12 sps:$4 sm:$0xff]  }
  0xb4   : > { %779 = vmatprep.subr.bf16.mxu0 %v2939_v9  ;;  %807 = vmatprep.mubr.bf16.mxu0 %v3340_v26  ;;  %v2959_v29 = vld [vmem:[%s3642_s7 + $0xac] ss:$12 sps:$4 sm:$0xff]   ;;  %v2961_v30 = vld [vmem:[%s3642_s7 + $0xa8] ss:$12 sps:$4 sm:$0xff]   ;;  %v3731_v36 = vshrl.u32 %v570_v34, 7  ;;  %vm858_vm1 = vcmask 261120  }
  0xb5   : > { %2708 = vmatprep.mubr.msk.bf16.mxu1 %vm3341_vm0, %v3339_v4  ;;  %v3737_v38 = vld [vmem:[%s3666_s24] sm:$0xff]  ;;  %s3342_s7 = smov 96   ;;  %s3343_s11 = smov 32   ;;  %vm924_vm2 = vcmask 1043456   ;;  %v3769_v6 = vand.u32 127, %v570_v34  ;;  %vm907_vm4 = vcmask 64512  }
  0xb6   : > { %2697 = vmatpush3.bf16.msra.mxu1 %v2942_v15  ;;  %v3734_v37 = vsub.s32 0, %v3731_v36  ;;  %v3740_v39 = vsub.s32 1, %v3731_v36  ;;  %v630_v47 = vld [vmem:[%s3671_s9] sm:$0x7]  ;;  %v3752_v48 = vsub.s32 2, %v3731_v36  ;;  %s3344_s10 = smov 64  }
  0xb7   : > { %780 = vmatpush1.bf16.msra.mxu0 %v2941_v14  ;;  %2698 = vmatprep.subr.bf16.mxu1 %v3339_v4  ;;  %vm574_vm3 = vcmp.le.s32.totalorder %v3769_v6, %v3731_v36  ;;  %vm1088_vm5 = vcmask 523520   ;;  %vm1206_vm6 = vcmask 785920   ;;  %vm1324_vm7 = vcmask 1048320   ;;  %p2590_p3 = scmp.ne.s32.totalorder %s3311_s27, 1 }
  0xb8   : > { %781 = vmatprep.subr.bf16.mxu0 %v2943_v16  ;;  %v590_v40 = vrot.slane %v3737_v38, %v3734_v37  ;;  %v595_v43 = vrot.slane %v3737_v38, %v3740_v39  ;;  %v639_v49 = vrot.slane %v630_v47, %v3740_v39  ;;  %v643_v54 = vrot.slane %v630_v47, %v3752_v48  ;;  %s4097_s30 = sld [smem:[#allocation33_spill]] (!%p2590_p3) }
  0xb9   : > { %v635_v60 = vrot.slane %v630_v47, %v3734_v37  ;;  %vm2143_vm8 = vcmask (!%p2590_p3), 1040384   ;;  %vm3346_vm9 = vmmov (!%p2590_p3), 0  }
  0xba   : > { %2699 = vmatpush3.bf16.msra.mxu1 %v2946_v18 }
  0xbb   : > { %782 = vmatpush1.bf16.msra.mxu0 %v2945_v17  ;;  %2700 = vmatprep.subr.bf16.mxu1 %v3339_v4 }
  0xbc   : > { %783 = vmatprep.subr.bf16.mxu0 %v2947_v19 }
  0xbe   : > { %2701 = vmatpush3.bf16.msra.mxu1 %v2950_v21  ;;  %s4098_s19 = smov (!%p2590_p3), %s4097_s30 }
  0xbf   : > { %784 = vmatpush1.bf16.msra.mxu0 %v2949_v20  ;;  %2702 = vmatprep.subr.bf16.mxu1 %v3339_v4 }
  0xc0   : > { %785 = vmatprep.subr.bf16.mxu0 %v2951_v22 }
  0xc2   : > { %2703 = vmatpush3.bf16.msra.mxu1 %v2954_v24 }
  0xc3   : > { %786 = vmatpush1.bf16.msra.mxu0 %v2953_v23  ;;  %2704 = vmatprep.subr.bf16.mxu1 %v3339_v4 }
  0xc4   : > { %787 = vmatprep.subr.bf16.mxu0 %v2955_v25 }
  0xc6   : > { %2705 = vmatpush3.bf16.msra.mxu1 %v2958_v28 }
  0xc7   : > { %788 = vmatpush1.bf16.msra.mxu0 %v2957_v27  ;;  %2706 = vmatprep.subr.bf16.mxu1 %v3339_v4 }
  0xc8   : > { %789 = vmatprep.subr.bf16.mxu0 %v2959_v29 }
  0xca   : > { %2707 = vmatpush3.bf16.msra.mxu1 %v2962_v31 }
  0xcb   : > { %790 = vmatpush1.bf16.msra.mxu0 %v2961_v30  ;;  %2712 = vmatprep.subr.bf16.mxu1 %v3339_v4 }
  0xcc   : > { %2736 = vmatprep.subr.bf16.mxu0 %v3339_v4 }
 0x13a   : > { %v576_v10 = vpop.xlane.xlu0 %575 }
 0x13b   : > { %v578_v11 = vmul.f32 0.0078125, %v576_v10 }
 0x13d   : > { %v579_v12 = vsub.f32 %v3690_v1, %v578_v11 }
 0x13f   : > { %v580_v13 = vmul.f32 %v579_v12, %v579_v12 }
 0x141   : > { %581 = vadd.xlane.f32.xlu0 %v580_v13 }
 0x1ce   : > { %v582_v32 = vpop.xlane.xlu0 %581 }
 0x1cf   : > { %v583_v33 = vmul.f32 0.0078125, %v582_v32 }
 0x1d1   : > { %v584_v35 = vadd.f32 1e-05, %v583_v33 }
 0x1d3   : > { %3051 = vrsqrt.f32 %v584_v35 }
 0x1dd   : > { %v3052_v41 = vpop.eup %3051 }
 0x1de   : > { %v586_v42 = vmul.f32 %v3052_v41, %v579_v12 }
 0x1e0   : > { %v591_v44 = vmul.f32 %v590_v40, %v586_v42 }
 0x1e2   : > { %v596_v45 = vadd.f32 %v595_v43, %v591_v44 }
 0x1e4   : > { %v597_v46 = vpack.c.bf16 %v596_v45, %v596_v45 }
 0x1e6   : > { %808 = vmatmul.mubr.bf16.vlgmr.msra.gmra.mrb[0].mxu0 %v597_v46  ;;  %2709 = vmatmul.mubr.bf16.vlgmr.msra.gmra.mrb[0].mxu1 %v597_v46 }
 0x1e7   : > { %2714 = vmatprep.mubr.msk.bf16.mxu1 %vm3341_vm0, %v3339_v4  ;;  %2738 = vmatprep.mubr.msk.bf16.mxu0 %vm3341_vm0, %v3339_v4 }
 0x2b9   : > { %v809_v50 = vpop.f32.mrb[0].mxu0  ;;  %v850_v51 = vpop.f32.mrb[0].mxu1 }
 0x2ba   : > { %v811_v52 = vpop.f32.mrb[1].mxu0  ;;  %v2710_v53 = vpop.f32.mrb[1].mxu1  ;;  %v851_v62 = vadd.f32 %v850_v51, %v643_v54  ;;  %v810_v0 = vadd.f32 %v809_v50, %v635_v60 }
 0x2bb   : > { %v812_v55 = vadd.f32 %v811_v52, %v639_v49  ;;  %v813_v56 = vpop.f32.mrb[2].mxu0  ;;  %v853_v57 = vpop.f32.mrb[2].mxu1 }
 0x2bc   : > { %v814_v58 = vpop.f32.mrb[3].mxu0  ;;  %v2711_v59 = vpop.f32.mrb[3].mxu1  ;;  %v3760_v2 = vpack.c.bf16 %v851_v62, %v851_v62  ;;  %v856_v3 = vpack.c.bf16 %v810_v0, %v810_v0 }
 0x2bd   : > { %v857_v61 = vpack.c.bf16 %v812_v55, %v812_v55 }
 0x2be   : > { %v926_v5 = vsel %vm924_vm2, %v3760_v2, 0 }
 0x2bf   : > { %973 = vrot.lane.b32.xlu0 %v857_v61, %s3342_s7  ;;  %v863_v63 = vsel %vm858_vm1, %v857_v61, 0 }
 0x2c0   : > { %2713 = vmatpush3.bf16.xpose.msra.mxu1 %v863_v63 }
 0x2c1   : > { %2718 = vmatprep.subr.bf16.mxu1 %v3339_v4 }
 0x2c3   : > { %1210 = vrot.lane.b32.xlu0 %v857_v61, %s3343_s11 }
 0x2c7   : > { %2715 = vmatmul.mubr.msk.bf16.vlgmr.msra.gmra.mrb[4].mxu1 %vm858_vm1, %v856_v3 }
 0x2c8   : > { %2719 = vmatpush3.bf16.msra.mxu1 %v926_v5  ;;  %2720 = vmatprep.mubr.msk.bf16.mxu1 %vm3341_vm0, %v3339_v4 }
 0x2c9   : > { %2724 = vmatprep.subr.bf16.mxu1 %v3339_v4 }
 0x331   : > { %v974_v21 = vpop.permute.xlu0 %973 }
 0x332   : > { %v979_v29 = vsel %vm858_vm1, %v974_v21, 0 }
 0x335   : > { %v1211_v27 = vpop.permute.xlu0 %1210 }
 0x336   : > { %v1216_v31 = vsel %vm858_vm1, %v1211_v27, 0 }
 0x39a   : > { %v899_v7 = vpop.f32.mrb[4].mxu1 }
 0x39b   : > { %v905_v8 = vmul.f32 0.17677669, %v899_v7  ;;  %v2716_v9 = vpop.f32.mrb[5].mxu1 }
 0x39c   : > { %v902_v10 = vpop.f32.mrb[6].mxu1 }
 0x39d   : > { %v2717_v11 = vpop.f32.mrb[7].mxu1  ;;  %v906_v12 = vsel %vm574_vm3, %v905_v8, -1e+30 }
 0x39e   : > { %v908_v13 = vsel %vm907_vm4, %v906_v12, -inf }
 0x39f   : > { %909 = vmax.xlane.f32.xlu1 %v908_v13 }
 0x42c   : > { %v910_v14 = vpop.xlane.xlu1 %909 }
 0x42d   : > { %v911_v15 = vsub.f32 %v906_v12, %v910_v14 }
 0x42f   : > { %v912_v16 = vmul.f32 1.442695, %v911_v15 }
 0x431   : > { %3053 = vpow2.f32 %v912_v16 }
 0x43b   : > { %v3054_v17 = vpop.eup %3053 }
 0x43c   : > { %v914_v18 = vsel %vm907_vm4, %v3054_v17, 0.0 }
 0x43d   : > { %915 = vadd.xlane.f32.xlu1 %v914_v18 }
 0x44e   : > { %970 = vrot.lane.b32.xlu1 %v856_v3, %s3342_s7 }
 0x452   : > { %1092 = vrot.lane.b32.xlu1 %v857_v61, %s3344_s10 }
 0x456   : > { %1090 = vrot.lane.b32.xlu1 %v856_v3, %s3344_s10 }
 0x45a   : > { %1208 = vrot.lane.b32.xlu1 %v856_v3, %s3343_s11 }
 0x4ca   : > { %v916_v19 = vpop.xlane.xlu1 %915 }
 0x4cb   : > { %3055 = vrcp.f32 %v916_v19 }
 0x4ce   : > { %v971_v20 = vpop.permute.xlu1 %970 }
 0x4d2   : > { %v1093_v22 = vpop.permute.xlu1 %1092 }
 0x4d3   : > { %v1098_v23 = vsel %vm858_vm1, %v1093_v22, 0 }
 0x4d4   : > { %2737 = vmatpush3.bf16.xpose.msra.mxu0 %v1098_v23 }
 0x4d5   : > { %v3056_v24 = vpop.eup %3055  ;;  %2748 = vmatprep.subr.bf16.mxu0 %v3339_v4 }
 0x4d6   : > { %v918_v25 = vmul.f32 %v3056_v24, %v3054_v17  ;;  %v1091_v30 = vpop.permute.xlu1 %1090 }
 0x4d8   : > { %v919_v28 = vpack.c.bf16 %v918_v25, %v918_v25 }
 0x4da   : > { %2721 = vmatmul.mubr.msk.bf16.vlgmr.msra.gmra.mrb[8].mxu1 %vm907_vm4, %v919_v28  ;;  %v1209_v32 = vpop.permute.xlu1 %1208 }
 0x4db   : > { %2725 = vmatpush3.bf16.xpose.msra.mxu1 %v979_v29  ;;  %2739 = vmatmul.mubr.msk.bf16.vlgmr.msra.gmra.mrb[4].mxu0 %vm858_vm1, %v1091_v30 }
 0x4dc   : > { %2749 = vmatpush3.bf16.xpose.msra.mxu0 %v1216_v31  ;;  %2726 = vmatprep.mubr.msk.bf16.mxu1 %vm3341_vm0, %v3339_v4 }
 0x4dd   : > { %2750 = vmatprep.mubr.msk.bf16.mxu0 %vm3341_vm0, %v3339_v4  ;;  %2730 = vmatprep.subr.bf16.mxu1 %v3339_v4 }
 0x4de   : > { %2760 = vmatprep.subr.bf16.mxu0 %v3339_v4 }
 0x4e2   : > { %2727 = vmatmul.mubr.msk.bf16.vlgmr.msra.gmra.mrb[12].mxu1 %vm858_vm1, %v971_v20 }
 0x4e3   : > { %2751 = vmatmul.mubr.msk.bf16.vlgmr.msra.gmra.mrb[8].mxu0 %vm858_vm1, %v1209_v32  ;;  %2732 = vmatprep.mubr.msk.bf16.mxu1 %vm3341_vm0, %v3339_v4 }
 0x4e4   : > { %2776 = vmatprep.mubr.msk.bf16.mxu0 %vm3341_vm0, %v3339_v4 }
 0x5ad   : > { %v962_v33 = vpop.f32.mrb[8].mxu1 }
 0x5ae   : > { %968 = vst.msk [vmem:[#allocation3] sm:$0xff] %vm858_vm1, %v962_v33  ;;  %v2722_v34 = vpop.f32.mrb[9].mxu1  ;;  %v1134_v35 = vpop.f32.mrb[4].mxu0 }
 0x5af   : > { %v1140_v40 = vmul.f32 0.17677669, %v1134_v35  ;;  %v965_v41 = vpop.f32.mrb[10].mxu1  ;;  %v2740_v42 = vpop.f32.mrb[5].mxu0  ;;  %v2963_v35 = vld [vmem:[%s3676_s3] sm:$0xff]  }
 0x5b0   : > { %v2723_v43 = vpop.f32.mrb[11].mxu1  ;;  %v1137_v44 = vpop.f32.mrb[6].mxu0  ;;  %2761 = vmatpush3.bf16.msra.mxu0 %v2963_v35  ;;  %v2965_v41 = vld [vmem:[%s3676_s3 + $0x10] sm:$0xff]   ;;  %v2966_v42 = vld [vmem:[%s3676_s3 + $0x18] sm:$0xff]  }
 0x5b1   : > { %v2741_v45 = vpop.f32.mrb[7].mxu0  ;;  %v1141_v46 = vsel %vm574_vm3, %v1140_v40, -1e+30  ;;  %v2964_v40 = vld [vmem:[%s3676_s3 + $0x8] sm:$0xff]   ;;  %2762 = vmatprep.subr.bf16.mxu0 %v3339_v4  ;;  %v2967_v43 = vld [vmem:[%s3676_s3 + $0x20] sm:$0xff]  }
 0x5b2   : > { %v1142_v47 = vsel %vm907_vm4, %v1141_v46, -inf  ;;  %v2968_v44 = vld [vmem:[%s3676_s3 + $0x28] sm:$0xff]   ;;  %v3001_v35 = vld [vmem:[%s3649_s16 + $0xa0] ss:$16 sps:$4 sm:$0xff]  }
 0x5b3   : > { %1143 = vmax.xlane.f32.xlu1 %v1142_v47 }
 0x5b4   : > { %2763 = vmatpush3.bf16.msra.mxu0 %v2964_v40  ;;  %v3004_v40 = vld [vmem:[%s3649_s16 + $0xa8] ss:$16 sps:$4 sm:$0xff]  }
 0x5b5   : > { %v1015_v49 = vpop.f32.mrb[12].mxu1  ;;  %2764 = vmatprep.subr.bf16.mxu0 %v3339_v4 }
 0x5b6   : > { %v1021_v50 = vmul.f32 0.17677669, %v1015_v49  ;;  %v2728_v51 = vpop.f32.mrb[13].mxu1  ;;  %v1252_v52 = vpop.f32.mrb[8].mxu0 }
 0x5b7   : > { %v1258_v53 = vmul.f32 0.17677669, %v1252_v52  ;;  %v1018_v54 = vpop.f32.mrb[14].mxu1  ;;  %v2752_v55 = vpop.f32.mrb[9].mxu0  ;;  %v2970_v51 = vld [vmem:[%s3676_s3 + $0x38] sm:$0xff]  }
 0x5b8   : > { %v2729_v56 = vpop.f32.mrb[15].mxu1  ;;  %v1255_v57 = vpop.f32.mrb[10].mxu0  ;;  %v1022_v58 = vsel %vm574_vm3, %v1021_v50, -1e+30  ;;  %2765 = vmatpush3.bf16.msra.mxu0 %v2965_v41  ;;  %v2969_v50 = vld [vmem:[%s3676_s3 + $0x30] sm:$0xff]  }
 0x5b9   : > { %v2753_v59 = vpop.f32.mrb[11].mxu0  ;;  %v1023_v60 = vsel %vm907_vm4, %v1022_v58, -inf  ;;  %v1259_v61 = vsel %vm574_vm3, %v1258_v53, -1e+30  ;;  %2766 = vmatprep.subr.bf16.mxu0 %v3339_v4  ;;  %v3009_v41 = vld [vmem:[%s3649_s16 + $0xc4] ss:$16 sps:$4 sm:$0xff]  }
 0x5ba   : > { %1024 = vmax.xlane.f32.xlu0 %v1023_v60  ;;  %v1260_v62 = vsel %vm907_vm4, %v1259_v61, -inf }
 0x5bc   : > { %2767 = vmatpush3.bf16.msra.mxu0 %v2966_v42  ;;  %v3012_v42 = vld [vmem:[%s3649_s16 + $0xcc] ss:$16 sps:$4 sm:$0xff]  }
 0x5bd   : > { %2768 = vmatprep.subr.bf16.mxu0 %v3339_v4 }
 0x5be   : > { %1261 = vmax.xlane.f32.xlu0 %v1260_v62 }
 0x5c0   : > { %2769 = vmatpush3.bf16.msra.mxu0 %v2967_v43  ;;  %v3007_v43 = vld [vmem:[%s3649_s16 + $0xc0] ss:$16 sps:$4 sm:$0xff]  }
 0x5c1   : > { %2770 = vmatprep.subr.bf16.mxu0 %v3339_v4 }
 0x5c4   : > { %2771 = vmatpush3.bf16.msra.mxu0 %v2968_v44  ;;  %v3010_v44 = vld [vmem:[%s3649_s16 + $0xc8] ss:$16 sps:$4 sm:$0xff]  }
 0x5c5   : > { %2772 = vmatprep.subr.bf16.mxu0 %v3339_v4 }
 0x5c8   : > { %2773 = vmatpush3.bf16.msra.mxu0 %v2969_v50 }
 0x5c9   : > { %2774 = vmatprep.subr.bf16.mxu0 %v3339_v4 }
 0x5cc   : > { %2775 = vmatpush3.bf16.msra.mxu0 %v2970_v51 }
 0x640   : > { %v1144_v63 = vpop.xlane.xlu1 %1143 }
 0x641   : > { %v1145_v0 = vsub.f32 %v1141_v46, %v1144_v63 }
 0x643   : > { %v1146_v3 = vmul.f32 1.442695, %v1145_v0  ;;  %v1435_v0 = vsub.s32 4, %v3731_v36 }
 0x645   : > { %3057 = vpow2.f32 %v1146_v3  ;;  %v1436_v3 = vrot.slane %v3737_v38, %v1435_v0  ;;  %v3023_v0 = vld [vmem:[%s3683_s23 + $0x48] sm:$0xff]  }
 0x647   : > { %v1025_v5 = vpop.xlane.xlu0 %1024 }
 0x648   : > { %v1026_v7 = vsub.f32 %v1022_v58, %v1025_v5 }
 0x64a   : > { %v1027_v8 = vmul.f32 1.442695, %v1026_v7 }
 0x64b   : > { %v1262_v9 = vpop.xlane.xlu0 %1261 }
 0x64c   : > { %3059 = vpow2.f32 %v1027_v8  ;;  %v1263_v10 = vsub.f32 %v1259_v61, %v1262_v9 }
 0x64e   : > { %v1264_v11 = vmul.f32 1.442695, %v1263_v10 }
 0x64f   : > { %v3058_v12 = vpop.eup %3057 }
 0x650   : > { %3061 = vpow2.f32 %v1264_v11  ;;  %v1148_v13 = vsel %vm907_vm4, %v3058_v12, 0.0 }
 0x651   : > { %1149 = vadd.xlane.f32.xlu0 %v1148_v13  ;;  %v2974_v13 = vld [vmem:[%s3649_s16 + $0x8] ss:$16 sps:$4 sm:$0xff]  }
 0x656   : > { %v3060_v6 = vpop.eup %3059 }
 0x657   : > { %v1029_v14 = vsel %vm907_vm4, %v3060_v6, 0.0 }
 0x658   : > { %1030 = vadd.xlane.f32.xlu0 %v1029_v14  ;;  %v2979_v14 = vld [vmem:[%s3649_s16 + $0x24] ss:$16 sps:$4 sm:$0xff]  }
 0x65a   : > { %v3062_v15 = vpop.eup %3061 }
 0x65b   : > { %v1266_v16 = vsel %vm907_vm4, %v3062_v15, 0.0 }
 0x65c   : > { %1267 = vadd.xlane.f32.xlu1 %v1266_v16  ;;  %v2980_v16 = vld [vmem:[%s3649_s16 + $0x28] ss:$16 sps:$4 sm:$0xff]  }
 0x66d   : > { %1154 = vrot.lane.b32.xlu1 %v3760_v2, %s3344_s10 }
 0x66e   : > { %1036 = vrot.lane.b32.xlu0 %v3760_v2, %s3342_s7 }
 0x671   : > { %1272 = vrot.lane.b32.xlu1 %v3760_v2, %s3343_s11 }
 0x6de   : > { %v1150_v17 = vpop.xlane.xlu0 %1149 }
 0x6e5   : > { %v1031_v18 = vpop.xlane.xlu0 %1030 }
 0x6e6   : > { %3063 = vrcp.f32 %v1031_v18  ;;  %v2988_v18 = vld [vmem:[%s3649_s16 + $0x4c] ss:$16 sps:$4 sm:$0xff]  }
 0x6e7   : > { %3065 = vrcp.f32 %v1150_v17  ;;  %v2985_v17 = vld [vmem:[%s3649_s16 + $0x44] ss:$16 sps:$4 sm:$0xff]  }
 0x6e9   : > { %v1037_v19 = vpop.permute.xlu0 %1036  ;;  %v1268_v21 = vpop.xlane.xlu1 %1267 }
 0x6ea   : > { %v1042_v20 = vsel %vm924_vm2, %v1037_v19, 0  ;;  %3067 = vrcp.f32 %v1268_v21  ;;  %v2983_v19 = vld [vmem:[%s3649_s16 + $0x40] ss:$16 sps:$4 sm:$0xff]  }
 0x6eb   : > { %2731 = vmatpush3.bf16.msra.mxu1 %v1042_v20  ;;  %v2986_v20 = vld [vmem:[%s3649_s16 + $0x48] ss:$16 sps:$4 sm:$0xff]  }
 0x6ec   : > { %2742 = vmatprep.subr.bf16.mxu1 %v3339_v4 }
 0x6ed   : > { %v1155_v24 = vpop.permute.xlu1 %1154 }
 0x6ee   : > { %v1160_v28 = vsel %vm924_vm2, %v1155_v24, 0 }
 0x6f0   : > { %v3064_v22 = vpop.eup %3063 }
 0x6f1   : > { %v1033_v23 = vmul.f32 %v3064_v22, %v3060_v6  ;;  %v3066_v27 = vpop.eup %3065  ;;  %v1273_v29 = vpop.permute.xlu1 %1272  ;;  %v2976_v6 = vld [vmem:[%s3649_s16 + $0xc] ss:$16 sps:$4 sm:$0xff]  }
 0x6f2   : > { %v1152_v2 = vmul.f32 %v3066_v27, %v3058_v12  ;;  %v1278_v32 = vsel %vm924_vm2, %v1273_v29, 0  ;;  %v2973_v12 = vld [vmem:[%s3649_s16 + $0x4] ss:$16 sps:$4 sm:$0xff]   ;;  %1715 = vmatprep.subr.bf16.mxu0 %v2976_v6  ;;  %v2994_v27 = vld [vmem:[%s3649_s16 + $0x6c] ss:$16 sps:$4 sm:$0xff]  }
 0x6f3   : > { %v1034_v25 = vpack.c.bf16 %v1033_v23, %v1033_v23  ;;  %v2997_v29 = vld [vmem:[%s3649_s16 + $0x84] ss:$16 sps:$4 sm:$0xff]   ;;  %v3033_v6 = vld [vmem:[%s3683_s23 + $0x18] sm:$0xff]  }
 0x6f4   : > { %v1153_v30 = vpack.c.bf16 %v1152_v2, %v1152_v2  ;;  %v3068_v31 = vpop.eup %3067  ;;  %v2992_v2 = vld [vmem:[%s3649_s16 + $0x68] ss:$16 sps:$4 sm:$0xff]  }
 0x6f5   : > { %2733 = vmatmul.mubr.msk.bf16.vlgmr.msra.gmra.mrb[16].mxu1 %vm907_vm4, %v1034_v25  ;;  %v1270_v33 = vmul.f32 %v3068_v31, %v3062_v15  ;;  %v2982_v15 = vld [vmem:[%s3649_s16 + $0x2c] ss:$16 sps:$4 sm:$0xff]   ;;  %v2991_v25 = vld [vmem:[%s3649_s16 + $0x64] ss:$16 sps:$4 sm:$0xff]   ;;  %v2995_v31 = vld [vmem:[%s3649_s16 + $0x80] ss:$16 sps:$4 sm:$0xff]  }
 0x6f6   : > { %2743 = vmatpush3.bf16.msra.mxu1 %v1160_v28  ;;  %2744 = vmatprep.mubr.msk.bf16.mxu1 %vm3341_vm0, %v3339_v4  ;;  %v2989_v28 = vld [vmem:[%s3649_s16 + $0x60] ss:$16 sps:$4 sm:$0xff]  }
 0x6f7   : > { %2754 = vmatprep.subr.bf16.mxu1 %v3339_v4  ;;  %v1271_v34 = vpack.c.bf16 %v1270_v33, %v1270_v33  ;;  %v3003_v33 = vld [vmem:[%s3649_s16 + $0xa4] ss:$16 sps:$4 sm:$0xff]  }
 0x6fd   : > { %2745 = vmatmul.mubr.msk.bf16.vlgmr.msra.gmra.mrb[20].mxu1 %vm907_vm4, %v1153_v30  ;;  %v3000_v30 = vld [vmem:[%s3649_s16 + $0x8c] ss:$16 sps:$4 sm:$0xff]  }
 0x6fe   : > { %2755 = vmatpush3.bf16.msra.mxu1 %v1278_v32  ;;  %2756 = vmatprep.mubr.msk.bf16.mxu1 %vm3341_vm0, %v3339_v4  ;;  %v2998_v32 = vld [vmem:[%s3649_s16 + $0x88] ss:$16 sps:$4 sm:$0xff]  }
 0x6ff   : > { %1674 = vmatprep.subr.bf16.mxu1 %v2973_v12  ;;  %v3031_v12 = vld [vmem:[%s3683_s23 + $0x58] sm:$0xff]  }
 0x705   : > { %2757 = vmatmul.mubr.msk.bf16.vlgmr.msra.gmra.mrb[24].mxu1 %vm907_vm4, %v1271_v34  ;;  %v3006_v34 = vld [vmem:[%s3649_s16 + $0xac] ss:$16 sps:$4 sm:$0xff]  }
 0x706   : > { %1706 = vmatprep.mubr.bf16.mxu1 %v3340_v26 }
 0x7c8   : > { %v1078_v45 = vpop.f32.mrb[16].mxu1 }
 0x7c9   : > { %1085 = vrot.lane.b32.xlu1 %v1078_v45, %s3343_s11  ;;  %v2734_v46 = vpop.f32.mrb[17].mxu1  ;;  %v3015_v45 = vld [vmem:[%s3649_s16 + $0xe4] ss:$16 sps:$4 sm:$0xff]  }
 0x7ca   : > { %v1081_v47 = vpop.f32.mrb[18].mxu1  ;;  %v3018_v46 = vld [vmem:[%s3649_s16 + $0xec] ss:$16 sps:$4 sm:$0xff]  }
 0x7cb   : > { %v2735_v49 = vpop.f32.mrb[19].mxu1  ;;  %v3013_v47 = vld [vmem:[%s3649_s16 + $0xe0] ss:$16 sps:$4 sm:$0xff]  }
 0x7cc   : > { %v3016_v49 = vld [vmem:[%s3649_s16 + $0xe8] ss:$16 sps:$4 sm:$0xff]  }
 0x7d0   : > { %v1196_v52 = vpop.f32.mrb[20].mxu1 }
 0x7d1   : > { %1203 = vrot.lane.b32.xlu0 %v1196_v52, %s3344_s10  ;;  %v2746_v53 = vpop.f32.mrb[21].mxu1 }
 0x7d2   : > { %v1199_v54 = vpop.f32.mrb[22].mxu1  ;;  %v1456_v53 = vsub.s32 3, %v3731_v36 }
 0x7d3   : > { %v2747_v55 = vpop.f32.mrb[23].mxu1  ;;  %v1452_v54 = vrot.slane %v3737_v38, %v3752_v48 }
 0x7d8   : > { %v1314_v56 = vpop.f32.mrb[24].mxu1 }
 0x7d9   : > { %1321 = vrot.lane.b32.xlu1 %v1314_v56, %s3342_s7  ;;  %v2758_v57 = vpop.f32.mrb[25].mxu1 }
 0x7da   : > { %v1317_v58 = vpop.f32.mrb[26].mxu1  ;;  %v1457_v57 = vrot.slane %v3737_v38, %v1456_v53 }
 0x7db   : > { %v2759_v59 = vpop.f32.mrb[27].mxu1 }
 0x83b   : > { %v1086_v60 = vpop.permute.xlu1 %1085 }
 0x83c   : > { %1089 = vst.msk [vmem:[#allocation3] sm:$0xff] %vm1088_vm5, %v1086_v60 }
 0x843   : > { %v1204_v61 = vpop.permute.xlu0 %1203 }
 0x844   : > { %1207 = vst.msk [vmem:[#allocation3] sm:$0xff] %vm1206_vm6, %v1204_v61  ;;  %v3019_v61 = vld [vmem:[%s3683_s23 + $0x40] sm:$0xff]  }
 0x84b   : > { %v1322_v4 = vpop.permute.xlu1 %1321 }
 0x84c   : > { %1325 = vst.msk [vmem:[#allocation3] sm:$0xff] %vm1324_vm7, %v1322_v4  ;;  %v3020_v4 = vld [vmem:[%s3683_s23 + $0xc0] sm:$0xff]  }
 0x853   : > { %v1326_v62 = vld [vmem:[#allocation3] sm:$0xff] }
 0x854   : > { %v1327_v63 = vpack.c.bf16 %v1326_v62, %v1326_v62  ;;  %v3021_v62 = vld [vmem:[%s3683_s23] sm:$0xff]  }
 0x856   : > { %2777 = vmatmul.mubr.bf16.vlgmr.msra.gmra.mrb[12].mxu0 %v1327_v63  ;;  %v3022_v63 = vld [vmem:[%s3683_s23 + $0x80] sm:$0xff]  }
 0x857   : > { %1747 = vmatprep.mubr.bf16.mxu0 %v3340_v26  ;;  %v2971_v26 = vld [vmem:[%s3649_s16] ss:$16 sps:$4 sm:$0xff]   ;;  %1716 = vmatpush1.bf16.msra.mxu0 %v2974_v13  ;;  %v3032_v13 = vld [vmem:[%s3683_s23 + $0xd8] sm:$0xff]  }
 0x858   : > { %1675 = vmatpush1.bf16.msra.mxu1 %v2971_v26  ;;  %1717 = vmatprep.subr.bf16.mxu0 %v2982_v15  ;;  %v3030_v26 = vld [vmem:[%s3683_s23 + $0x90] sm:$0xff]   ;;  %v3035_v15 = vld [vmem:[%s3683_s23 + $0x60] sm:$0xff]  }
 0x859   : > { %1676 = vmatprep.subr.bf16.mxu1 %v2979_v14  ;;  %v3034_v14 = vld [vmem:[%s3683_s23 + $0x98] sm:$0xff]  }
 0x85b   : > { %1718 = vmatpush1.bf16.msra.mxu0 %v2980_v16  ;;  %v3037_v16 = vld [vmem:[%s3683_s23 + $0x20] sm:$0xff]  }
 0x85c   : > { %1719 = vmatprep.subr.bf16.mxu0 %v2988_v18  ;;  %v3039_v18 = vld [vmem:[%s3683_s23 + $0x68] sm:$0xff]  }
 0x85f   : > { %1720 = vmatpush1.bf16.msra.mxu0 %v2986_v20  ;;  %v3041_v20 = vld [vmem:[%s3683_s23 + $0x28] sm:$0xff]  }
 0x860   : > { %1721 = vmatprep.subr.bf16.mxu0 %v2994_v27  ;;  %v3047_v27 = vld [vmem:[%s3683_s23 + $0x78] sm:$0xff]  }
 0x863   : > { %1722 = vmatpush1.bf16.msra.mxu0 %v2992_v2  ;;  %v3049_v2 = vld [vmem:[%s3683_s23 + $0x38] sm:$0xff]  }
 0x864   : > { %1723 = vmatprep.subr.bf16.mxu0 %v3000_v30  ;;  %v1492_v30 = vld [vmem:[%s3681_s1] sm:$0xf]  ;;  %s2139_s1 = sld [smem:[#allocation5 + %s3315_s28]] (!%p2590_p3) }
 0x867   : > { %1724 = vmatpush1.bf16.msra.mxu0 %v2998_v32  ;;  %v1505_v32 = vrot.slane %v1492_v30, %v3752_v48 }
 0x868   : > { %1725 = vmatprep.subr.bf16.mxu0 %v3006_v34  ;;  %v1509_v34 = vrot.slane %v1492_v30, %v1456_v53 }
 0x86a   : > { %s2140_s3 = scalar_lea.vmem (!%p2590_p3), [#allocation2], %s2139_s1  ;;  %s4099_s1 = sld [smem:[#allocation32_spill]] (!%p2590_p3) }
 0x86b   : > { %1726 = vmatpush1.bf16.msra.mxu0 %v3004_v40 }
 0x86c   : > { %1727 = vmatprep.subr.bf16.mxu0 %v3012_v42 }
 0x86f   : > { %1728 = vmatpush1.bf16.msra.mxu0 %v3010_v44 }
 0x870   : > { %1729 = vmatprep.subr.bf16.mxu0 %v3018_v46 }
 0x873   : > { %1730 = vmatpush1.bf16.msra.mxu0 %v3016_v49 }
 0x874   : > { %2661 = vmatprep.subr.bf16.mxu0 %v3020_v4 }
 0x929   : > { %v1426_v5 = vpop.f32.mrb[12].mxu0 }
 0x92a   : > { %v1432_v7 = vadd.f32 %v1426_v5, %v3690_v1  ;;  %v2778_v8 = vpop.f32.mrb[13].mxu0  ;;  %v2977_v1 = vld [vmem:[%s3649_s16 + $0x20] ss:$16 sps:$4 sm:$0xff]   ;;  %v3025_v5 = vld [vmem:[%s3683_s23 + $0x8] sm:$0xff]  }
 0x92b   : > { %v1429_v9 = vpop.f32.mrb[14].mxu0  ;;  %1677 = vmatpush1.bf16.msra.mxu1 %v2977_v1  ;;  %v3027_v8 = vld [vmem:[%s3683_s23 + $0x50] sm:$0xff]   ;;  %v3036_v1 = vld [vmem:[%s3683_s23 + $0xe0] sm:$0xff]  }
 0x92c   : > { %v3857_v10 = vadd.f32 %v1436_v3, %v1432_v7  ;;  %v2779_v11 = vpop.f32.mrb[15].mxu0  ;;  %1678 = vmatprep.subr.bf16.mxu1 %v2985_v17  ;;  %v3024_v3 = vld [vmem:[%s3683_s23 + $0xc8] sm:$0xff]   ;;  %v3028_v9 = vld [vmem:[%s3683_s23 + $0xd0] sm:$0xff]   ;;  %v3038_v17 = vld [vmem:[%s3683_s23 + $0xa0] sm:$0xff]  }
 0x92d   : > { %v3026_v7 = vld [vmem:[%s3683_s23 + $0x88] sm:$0xff]   ;;  %v3029_v11 = vld [vmem:[%s3683_s23 + $0x10] sm:$0xff]  }
 0x92e   : > { %1438 = vadd.xlane.f32.xlu0 %v3857_v10 }
 0x92f   : > { %1679 = vmatpush1.bf16.msra.mxu1 %v2983_v19  ;;  %v3040_v19 = vld [vmem:[%s3683_s23 + $0xe8] sm:$0xff]  }
 0x930   : > { %1680 = vmatprep.subr.bf16.mxu1 %v2991_v25  ;;  %v3046_v25 = vld [vmem:[%s3683_s23 + $0xb0] sm:$0xff]  }
 0x933   : > { %1681 = vmatpush1.bf16.msra.mxu1 %v2989_v28  ;;  %v3048_v28 = vld [vmem:[%s3683_s23 + $0xf8] sm:$0xff]  }
 0x934   : > { %1682 = vmatprep.subr.bf16.mxu1 %v2997_v29  ;;  %v3050_v29 = vld [vmem:[%s3683_s23 + $0xb8] sm:$0xff]  }
 0x937   : > { %1683 = vmatpush1.bf16.msra.mxu1 %v2995_v31  ;;  %v1497_v31 = vrot.slane %v1492_v30, %v3734_v37 }
 0x938   : > { %1684 = vmatprep.subr.bf16.mxu1 %v3003_v33  ;;  %v1501_v33 = vrot.slane %v1492_v30, %v3740_v39  ;;  %v3087_v30 = vld [vmem:[%s4097_s30] sm:$0xff] (!%p2590_p3)  }
 0x93b   : > { %1685 = vmatpush1.bf16.msra.mxu1 %v3001_v35 }
 0x93c   : > { %1686 = vmatprep.subr.bf16.mxu1 %v3009_v41 }
 0x93f   : > { %1687 = vmatpush1.bf16.msra.mxu1 %v3007_v43 }
 0x940   : > { %1688 = vmatprep.subr.bf16.mxu1 %v3015_v45 }
 0x943   : > { %1689 = vmatpush1.bf16.msra.mxu1 %v3013_v47 }
 0x944   : > { %2639 = vmatprep.subr.bf16.mxu1 %v3019_v61 }
 0x9bb   : > { %v1439_v21 = vpop.xlane.xlu0 %1438 }
 0x9bc   : > { %v1440_v22 = vmul.f32 0.0078125, %v1439_v21  ;;  %v3042_v21 = vld [vmem:[%s3683_s23 + $0xa8] sm:$0xff]  }
 0x9be   : > { %v1441_v23 = vsub.f32 %v3857_v10, %v1440_v22  ;;  %v3043_v22 = vld [vmem:[%s3683_s23 + $0x70] sm:$0xff]  }
 0x9c0   : > { %v1442_v24 = vmul.f32 %v1441_v23, %v1441_v23 }
 0x9c2   : > { %1443 = vadd.xlane.f32.xlu1 %v1442_v24  ;;  %v3045_v24 = vld [vmem:[%s3683_s23 + $0x30] sm:$0xff]  }
 0xa4f   : > { %v1444_v50 = vpop.xlane.xlu1 %1443 }
 0xa50   : > { %v1445_v51 = vmul.f32 0.0078125, %v1444_v50 }
 0xa52   : > { %v1446_v52 = vadd.f32 1e-05, %v1445_v51 }
 0xa54   : > { %3069 = vrsqrt.f32 %v1446_v52 }
 0xa5e   : > { %v3070_v55 = vpop.eup %3069 }
 0xa5f   : > { %v1448_v56 = vmul.f32 %v3070_v55, %v1441_v23  ;;  %v3044_v23 = vld [vmem:[%s3683_s23 + $0xf0] sm:$0xff]  }
 0xa61   : > { %v1453_v58 = vmul.f32 %v1452_v54, %v1448_v56 }
 0xa63   : > { %v1458_v59 = vadd.f32 %v1457_v57, %v1453_v58 }
 0xa65   : > { %v1459_v60 = vpack.c.bf16 %v1458_v59, %v1458_v59 }
 0xa67   : > { %1707 = vmatmul.mubr.bf16.vlgmr.msra.gmra.mrb[28].mxu1 %v1459_v60  ;;  %1748 = vmatmul.mubr.bf16.vlgmr.msra.gmra.mrb[16].mxu0 %v1459_v60 }
 0xa68   : > { %2640 = vmatpush3.bf16.msra.mxu1 %v3021_v62  ;;  %2662 = vmatpush3.bf16.msra.mxu0 %v3022_v63 }
 0xa69   : > { %2641 = vmatprep.subr.bf16.mxu1 %v3023_v0  ;;  %2663 = vmatprep.subr.bf16.mxu0 %v3024_v3 }
 0xa6c   : > { %2642 = vmatpush3.bf16.msra.mxu1 %v3025_v5  ;;  %2664 = vmatpush3.bf16.msra.mxu0 %v3026_v7 }
 0xa6d   : > { %2643 = vmatprep.subr.bf16.mxu1 %v3027_v8  ;;  %2665 = vmatprep.subr.bf16.mxu0 %v3028_v9 }
 0xa70   : > { %2644 = vmatpush3.bf16.msra.mxu1 %v3029_v11  ;;  %2666 = vmatpush3.bf16.msra.mxu0 %v3030_v26 }
 0xa71   : > { %2645 = vmatprep.subr.bf16.mxu1 %v3031_v12  ;;  %2667 = vmatprep.subr.bf16.mxu0 %v3032_v13 }
 0xa74   : > { %2646 = vmatpush3.bf16.msra.mxu1 %v3033_v6  ;;  %2668 = vmatpush3.bf16.msra.mxu0 %v3034_v14 }
 0xa75   : > { %2647 = vmatprep.subr.bf16.mxu1 %v3035_v15  ;;  %2669 = vmatprep.subr.bf16.mxu0 %v3036_v1 }
 0xa78   : > { %2648 = vmatpush3.bf16.msra.mxu1 %v3037_v16  ;;  %2670 = vmatpush3.bf16.msra.mxu0 %v3038_v17  ;;  %v2131_v17 = vsub.s32 5, %v3731_v36 }
 0xa79   : > { %2649 = vmatprep.subr.bf16.mxu1 %v3039_v18  ;;  %2671 = vmatprep.subr.bf16.mxu0 %v3040_v19 }
 0xa7c   : > { %2650 = vmatpush3.bf16.msra.mxu1 %v3041_v20  ;;  %2672 = vmatpush3.bf16.msra.mxu0 %v3042_v21 }
 0xa7d   : > { %2651 = vmatprep.subr.bf16.mxu1 %v3043_v22  ;;  %2673 = vmatprep.subr.bf16.mxu0 %v3044_v23 }
 0xa80   : > { %2652 = vmatpush3.bf16.msra.mxu1 %v3045_v24  ;;  %2674 = vmatpush3.bf16.msra.mxu0 %v3046_v25 }
 0xa81   : > { %2653 = vmatprep.subr.bf16.mxu1 %v3047_v27  ;;  %2675 = vmatprep.subr.bf16.mxu0 %v3048_v28  ;;  %v2132_v27 = vrot.slane %v3737_v38, %v2131_v17  ;;  %v3345_v38 = vmov (!%p2590_p3), 0.0  }
 0xa84   : > { %2654 = vmatpush3.bf16.msra.mxu1 %v3049_v2  ;;  %2676 = vmatpush3.bf16.msra.mxu0 %v3050_v29 }
 0xa85   : > { %2780 = vmatprep.subr.bf16.mxu0 (!%p2590_p3), %v3345_v38 }
 0xb3a   : > { %v1708_v35 = vpop.f32.mrb[28].mxu1  ;;  %v1749_v40 = vpop.f32.mrb[16].mxu0 }
 0xb3b   : > { %v1709_v41 = vadd.f32 %v1708_v35, %v1497_v31  ;;  %v1750_v42 = vadd.f32 %v1749_v40, %v1505_v32  ;;  %v1710_v43 = vpop.f32.mrb[29].mxu1  ;;  %v1751_v44 = vpop.f32.mrb[17].mxu0  ;;  %v3089_v40 = vld [vmem:[%s4098_s19 + $0x10] sm:$0xff] (!%p2590_p3)  }
 0xb3c   : > { %v1711_v45 = vadd.f32 %v1710_v43, %v1501_v33  ;;  %v1752_v46 = vadd.f32 %v1751_v44, %v1509_v34  ;;  %v1712_v47 = vpop.f32.mrb[30].mxu1  ;;  %v1753_v49 = vpop.f32.mrb[18].mxu0  ;;  %v3092_v43 = vld [vmem:[%s4098_s19 + $0x28] sm:$0xff] (!%p2590_p3)   ;;  %v3093_v44 = vld [vmem:[%s4098_s19 + $0x30] sm:$0xff] (!%p2590_p3)  }
 0xb3d   : > { %v2554_v50 = vmul.f32 -1.702, %v1709_v41  ;;  %v2556_v51 = vmul.f32 -1.702, %v1750_v42  ;;  %v1713_v37 = vpop.f32.mrb[31].mxu1  ;;  %v1754_v52 = vpop.f32.mrb[19].mxu0 }
 0xb3e   : > { %v2555_v48 = vmul.f32 -1.702, %v1711_v45  ;;  %v2557_v54 = vmul.f32 -1.702, %v1752_v46 }
 0xb3f   : > { %v1764_v39 = vmul.f32 1.442695, %v2554_v50  ;;  %v1768_v55 = vmul.f32 1.442695, %v2556_v51  ;;  %v2142_v50 = vld [vmem:[%s4099_s1] sm:$0x3] (!%p2590_p3) }
 0xb40   : > { %v1766_v56 = vmul.f32 1.442695, %v2555_v48  ;;  %v1770_v53 = vmul.f32 1.442695, %v2557_v54  ;;  %v2159_v52 = vrot.slane (!%p2590_p3), %v2142_v50, 1 }
 0xb41   : > { %3071 = vpow2.f32 %v1764_v39 }
 0xb42   : > { %3073 = vpow2.f32 %v1768_v55 }
 0xb43   : > { %3075 = vpow2.f32 %v1766_v56 }
 0xb44   : > { %3077 = vpow2.f32 %v1770_v53 }
 0xb4b   : > { %v3072_v57 = vpop.eup %3071 }
 0xb4c   : > { %v3074_v58 = vpop.eup %3073  ;;  %v1772_v59 = vadd.f32 1.0, %v3072_v57 }
 0xb4d   : > { %v3076_v60 = vpop.eup %3075  ;;  %v1774_v61 = vadd.f32 1.0, %v3074_v58 }
 0xb4e   : > { %v3078_v4 = vpop.eup %3077  ;;  %3079 = vrcp.f32 %v1772_v59  ;;  %v1773_v62 = vadd.f32 1.0, %v3076_v60 }
 0xb4f   : > { %3081 = vrcp.f32 %v1774_v61  ;;  %v1775_v63 = vadd.f32 1.0, %v3078_v4 }
 0xb50   : > { %3083 = vrcp.f32 %v1773_v62 }
 0xb51   : > { %3085 = vrcp.f32 %v1775_v63 }
 0xb58   : > { %v3080_v0 = vpop.eup %3079 }
 0xb59   : > { %v3082_v3 = vpop.eup %3081  ;;  %v1784_v7 = vmul.f32 %v3080_v0, %v1709_v41  ;;  %v3090_v41 = vld [vmem:[%s4098_s19 + $0x18] sm:$0xff] (!%p2590_p3)  }
 0xb5a   : > { %v3084_v5 = vpop.eup %3083  ;;  %v1786_v9 = vmul.f32 %v3082_v3, %v1750_v42  ;;  %v3091_v42 = vld [vmem:[%s4098_s19 + $0x20] sm:$0xff] (!%p2590_p3)  }
 0xb5b   : > { %v3086_v8 = vpop.eup %3085  ;;  %v1785_v11 = vmul.f32 %v3084_v5, %v1711_v45  ;;  %v1788_v13 = vpack.c.bf16 %v1784_v7, %v1784_v7  ;;  %v3094_v45 = vld [vmem:[%s4098_s19 + $0x38] sm:$0xff] (!%p2590_p3)  }
 0xb5c   : > { %v1787_v26 = vmul.f32 %v3086_v8, %v1752_v46  ;;  %v1790_v14 = vpack.c.bf16 %v1786_v9, %v1786_v9 }
 0xb5d   : > { %v1789_v12 = vpack.c.bf16 %v1785_v11, %v1785_v11 }
 0xb5e   : > { %v1791_v6 = vpack.c.bf16 %v1787_v26, %v1787_v26 }
 0xb5f   : > { %2080 = vmatprep.mubr.bf16.mxu1 %v1789_v12 }
 0xb60   : > { %2120 = vmatprep.mubr.bf16.mxu0 %v1791_v6  ;;  %2081 = vmatmul.mubr.bf16.vlgmr.msra.gmra.mrb[32].mxu1 %v1788_v13 }
 0xb61   : > { %2121 = vmatmul.mubr.bf16.vlgmr.msra.gmra.mrb[20].mxu0 %v1790_v14 }
 0xb62   : > { %2781 = vmatpush3.bf16.msra.mxu0 (!%p2590_p3), %v3087_v30  ;;  %2796 = vmatprep.mubr.msk.bf16.mxu0 (!%p2590_p3), %vm3346_vm9, %v3345_v38 }
 0xb63   : > { %2782 = vmatprep.subr.bf16.mxu0 (!%p2590_p3), %v3345_v38 }
 0xc33   : > { %v2655_v15 = vpop.f32.mrb[32].mxu1 }
 0xc34   : > { %v2677_v1 = vpop.f32.mrb[20].mxu0  ;;  %v2656_v16 = vpop.f32.mrb[33].mxu1 }
 0xc35   : > { %v2657_v18 = vadd.f32 %v2656_v16, %v2655_v15  ;;  %v2678_v19 = vpop.f32.mrb[21].mxu0  ;;  %v2658_v20 = vpop.f32.mrb[34].mxu1 }
 0xc36   : > { %v2679_v21 = vadd.f32 %v2678_v19, %v2677_v1  ;;  %v2680_v22 = vpop.f32.mrb[22].mxu0  ;;  %v2659_v23 = vpop.f32.mrb[35].mxu1 }
 0xc37   : > { %v2681_v24 = vpop.f32.mrb[23].mxu0 }
 0xc38   : > { %v2123_v25 = vadd.f32 %v2679_v21, %v2657_v18  ;;  %2138 = sbr.rel (%p2590_p3) target bundleno = 3672 (0xe58), region = 80 }
 0xc3a   : > { %v2128_v28 = vadd.f32 %v2123_v25, %v3857_v10  ;;  %v3088_v10 = vld [vmem:[%s4098_s19 + $0x8] sm:$0xff] (!%p2590_p3)  }
 0xc3b   : > { %2783 = vmatpush3.bf16.msra.mxu0 (!%p2590_p3), %v3088_v10 }
 0xc3c   : > { %v2133_v2 = vadd.f32 %v2132_v27, %v2128_v28  ;;  %2784 = vmatprep.subr.bf16.mxu0 (!%p2590_p3), %v3345_v38 }
 0xc3e   : > { %2134 = vst [vmem:[#allocation2] sm:$0xff] %v2133_v2 }
 0xc3f   : > { %2785 = vmatpush3.bf16.msra.mxu0 %v3089_v40 }
 0xc40   : > { %2786 = vmatprep.subr.bf16.mxu0 %v3345_v38 }
 0xc43   : > { %2787 = vmatpush3.bf16.msra.mxu0 %v3090_v41 }
 0xc44   : > { %2788 = vmatprep.subr.bf16.mxu0 %v3345_v38 }
 0xc45   : > { %v2141_v36 = vld [vmem:[%s2140_s3] sm:$0x1] }
 0xc46   : > { %v2144_v29 = vsel %vm2143_vm8, %v2141_v36, 0.0 }
 0xc47   : > { %2145 = vadd.xlane.f32.xlu0 %v2144_v29  ;;  %2789 = vmatpush3.bf16.msra.mxu0 %v3091_v42 }
 0xc48   : > { %2790 = vmatprep.subr.bf16.mxu0 %v3345_v38 }
 0xc4b   : > { %2791 = vmatpush3.bf16.msra.mxu0 %v3092_v43 }
 0xc4c   : > { %2792 = vmatprep.subr.bf16.mxu0 %v3345_v38 }
 0xc4f   : > { %2793 = vmatpush3.bf16.msra.mxu0 %v3093_v44 }
 0xc50   : > { %2794 = vmatprep.subr.bf16.mxu0 %v3345_v38 }
 0xc53   : > { %2795 = vmatpush3.bf16.msra.mxu0 %v3094_v45 }
 0xcd4   : > { %v2146_v31 = vpop.xlane.xlu0 %2145 }
 0xcd5   : > { %v2147_v32 = vmul.f32 0.0078125, %v2146_v31 }
 0xcd7   : > { %v2148_v33 = vsub.f32 %v2141_v36, %v2147_v32 }
 0xcd9   : > { %v2149_v34 = vmul.f32 %v2148_v33, %v2148_v33 }
 0xcdb   : > { %v2150_v35 = vsel %vm2143_vm8, %v2149_v34, 0.0 }
 0xcdc   : > { %2151 = vadd.xlane.f32.xlu0 %v2150_v35 }
 0xd69   : > { %v2152_v46 = vpop.xlane.xlu0 %2151 }
 0xd6a   : > { %v2153_v47 = vmul.f32 0.0078125, %v2152_v46 }
 0xd6c   : > { %v2154_v49 = vadd.f32 1e-05, %v2153_v47 }
 0xd6e   : > { %3095 = vrsqrt.f32 %v2154_v49 }
 0xd78   : > { %v3096_v51 = vpop.eup %3095 }
 0xd79   : > { %v2156_v37 = vmul.f32 %v3096_v51, %v2148_v33 }
 0xd7b   : > { %v2157_v48 = vmul.f32 %v2156_v37, %v2142_v50 }
 0xd7d   : > { %v2161_v54 = vadd.f32 %v2159_v52, %v2157_v48 }
 0xd7f   : > { %v2162_v39 = vpack.c.bf16 %v2161_v54, %v2161_v54 }
 0xd81   : > { %2797 = vmatmul.mubr.bf16.vlgmr.msra.gmra.mrb[0].mxu0 %v2162_v39 }
 0xe54   : > { %v2261_v55 = vpop.f32.mrb[0].mxu0 }
 0xe55   : > { %2267 = vst [vmem:[%s3687_s21] sm:$0x1] %v2261_v55  ;;  %v2798_v56 = vpop.f32.mrb[1].mxu0 }
 0xe56   : > { %v2264_v53 = vpop.f32.mrb[2].mxu0 }
 0xe57   : > { %v2799_v57 = vpop.f32.mrb[3].mxu0 }
 0xe58 PF: > { %s4100_s3 = sld [smem:[#allocation26_spill]]  ;;  %s2599_s16 = sshll.u32 %s3315_s28, 4 }
 0xe59   : > { %s4101_s24 = sld [smem:[#allocation34_spill]]  ;;  %s2281_s26 = sshll.u32 %s3687_s21, 4  ;;  %s2282_s26 = int_to_ptr.vmem [resolvable:$true] %s2281_s26 }
 0xe5a   : > { %s4103_s0 = sand.u32 1, %s3291_s22   ;;  %s3199_s9 = scalar_lea.vmem %s2282_s26, 16 }
 0xe5b   : > { %s2269_s29 = scalar_lea.sflag [#allocation8], %s4103_s0  ;;  %p3200_p12 = scmp.ne.s32.totalorder %s2282_s26, %s3199_s9 }
 0xe5c   : > { %s3347_s14 = smov [#allocation12]  }
 0xe5d   : > { %s3203_s6 = sshll.u32 %s3347_s14, 4  ;;  %s3204_s6 = int_to_ptr.vmem [resolvable:$false] %s3203_s6 }
 0xe5e   : > { %p4104_p2 = scmp.ne.s32.totalorder %s4100_s3, 0  ;;  %s3205_s20 = scalar_lea.vmem %s3204_s6, 32 }
 0xe5f   : > { %s4102_s18 = smov %s4101_s24  ;;  %s3976_s27 = scalar_lea.hbm %s4101_s24, %s2599_s16 }
 0xe60   : > { %p3201_p5 = pnand %p3200_p12, %p4104_p2  ;;  %p3206_p4 = scmp.lt.s32.totalorder %s2282_s26, %s3204_s6 }
 0xe61   : > { %p3207_p7 = scmp.lt.s32.totalorder %s3205_s20, %s3199_s9 }
 0xe62   : > { %p3202_p6 = pneg %p3201_p5 }
 0xe63   : > { %p3208_p11 = por %p3207_p7, %p3206_p4 }
 0xe65   : > { %p3209_p0 = pnand %p3208_p11, %p3202_p6 }
 0xe67   : > { %3212 = shalt.err (!%p3209_p0)
}
 0xe68   : > { %s3213_s28 = scalar_lea.hbm %s3976_s27, 16  ;;  %s3217_s23 = scalar_lea.hbm %s4102_s18, 32 }
 0xe69   : > { %p3214_p10 = scmp.ne.s32.totalorder %s3976_s27, %s3213_s28  ;;  %p3218_p1 = scmp.lt.u32.totalorder %s3976_s27, %s4102_s18 }
 0xe6a   : > { %p3219_p13 = scmp.lt.u32.totalorder %s3217_s23, %s3213_s28  ;;  %p3221_p12 = scmp.lt.u32.totalorder %s3213_s28, %s3976_s27 }
 0xe6b   : > { %p3215_p8 = pnand %p3214_p10, %p4104_p2 }
 0xe6c   : > { %p3220_p3 = por %p3219_p13, %p3218_p1 }
 0xe6d   : > { %p3216_p9 = pneg %p3215_p8 }
 0xe6e   : > { %p3222_p5 = por %p3221_p12, %p3220_p3 }
 0xe70   : > { %p3223_p6 = pnand %p3222_p5, %p3216_p9 }
 0xe72   : > { %3226 = shalt.err (!%p3223_p6)
}
 0xe73   : > { %2810 = dma.vmem_to_hbm [thread:$0]  (%p4104_p2), %s2282_s26, 16, %s3976_s27, %s2269_s29  }
 0xe74 PF: > { %s4105_s11 = sld [smem:[#allocation17_spill]]  ;;  %s4106_s10 = sld [smem:[#allocation27_spill]] }
 0xe75   : > { %p2827_p4 = scmp.ge.s32.totalorder %s3327_s12, 2 }
 0xe7a   : > { %s2293_s1 = sand.u32 1, %s4105_s11   ;;  %p4107_p7 = scmp.ne.s32.totalorder %s4106_s10, 0 }
 0xe7b   : > { %s2294_s16 = scalar_lea.sflag [#allocation8], %s2293_s1 }
 0xe7c   : > { %p2823_p11 = pnand %p2827_p4, %p4107_p7 }
 0xe7e   : > { %3282 = dma.done.wait (!%p2823_p11), %s2294_s16, 16  }
 0xe7f   : > { %3284 = vsyncadd (!%p2823_p11), %s2294_s16, 4294967280  ;;  %s36_s12 = sadd.s32 1, %s3327_s12   ;;  %s4108_s13 = sld [smem:[#allocation18_spill]] }
 0xe80   : > { %p33_p0 = scmp.ge.s32.totalorder %s36_s12, 6   ;;  %s4109_s23 = sld [smem:[#allocation25_spill]] }
 0xe81   : > { %s4110_s3 = sld [smem:[#allocation19_spill]]  ;;  %s4111_s26 = sld [smem:[#allocation24_spill]] }
 0xe82   : > { %s4112_s27 = sld [smem:[#allocation20_spill]]  ;;  %s4113_s28 = sld [smem:[#allocation21_spill]] }
 0xe83   : > { %s4114_s29 = sld [smem:[#allocation22_spill]]  ;;  %s4115_s30 = sld [smem:[#allocation23_spill]] }
 0xe84   : > { %s4116_s0 = smov %s3291_s22  ;;  %s4118_s24 = smov %s3303_s25 }
 0xe85   : > { %s4117_s22 = smov %s4108_s13  ;;  %35 = sbr.rel (!%p33_p0) target bundleno = 28 (0x1c), region = 153 }
 0xe87   : > { %s4119_s25 = smov %s4110_s3 }
 0xe8c   :  { %2298 = vsyncpa [#allocation7], 1 }
 0xe8d   :  { %2300 = vsyncpa [#allocation7 + $0x1], 1 }
 0xe8e   :  { %2301 = vsyncpa [#allocation10], 1 }
 0xe8f   :  { %2303 = vsyncpa [#allocation10 + $0x1], 1 }
 0xe90   :  { %2304 = vsyncpa [#allocation8], 1 }
 0xe91   :  { %2306 = vsyncpa [#allocation8 + $0x1], 1 }

</bundles_post_ra>
